<compile_context>
chip_gen: v7x
topology: tpu7x:2x2x1
jax: 0.10.0
libtpu: 0.0.40
codegen_flags: <defaults>
</compile_context>

<pallas_src>
import jax
import jax.numpy as jnp
from jax.experimental import pallas as pl
from jax.experimental.pallas import tpu as pltpu

# ---- small DistilBERT-like config ------------------------------------------
B, S = 2, 8          # batch, sequence length
BS = B * S           # batch folded into rows (sublane axis)
D = 32               # hidden dim
H = 4                # attention heads
DH = D // H          # head dim
FFN = 64             # ffn inner dim
LAYERS = 2           # transformer layers
VOCAB = 100          # vocab size
EPS = 1e-12          # DistilBERT LayerNorm eps


def _layernorm(x, g, b):
    mu = jnp.mean(x, axis=-1, keepdims=True)
    var = jnp.mean((x - mu) ** 2, axis=-1, keepdims=True)
    return (x - mu) * jax.lax.rsqrt(var + EPS) * g + b


# ---- fused encoder kernel ----------------------------------------------------
def encoder_kernel(attn_bias_ref, head_mask_ref, x_ref, emb_ln_ref,
                   wqkv_ref, bqkv_ref, wo_ref, vecs_ref,
                   w_in_ref, b_in_ref, w_out_ref, o_ref):
    # embedding LayerNorm (batch folded: x is (B*S, D))
    emb_ln = emb_ln_ref[...]
    x = _layernorm(x_ref[...], emb_ln[0:1, :], emb_ln[1:2, :])

    attn_bias = attn_bias_ref[...]      # (H*BS, BS) additive mask (0 / -1e9)
    head_mask = head_mask_ref[...]      # (H*BS, D)  1 where column belongs to row's head
    scale = 1.0 / (DH ** 0.5)

    for l in range(LAYERS):             # static unroll over layers, weights stacked on axis 0
        wqkv = wqkv_ref[l]              # (D, 3D)
        bqkv = bqkv_ref[l]              # (1, 3D)
        wo = wo_ref[l]                  # (D, D)
        vecs = vecs_ref[l]              # (6, D): bo, ln1_g, ln1_b, b_out, ln2_g, ln2_b
        bo, g1, b1 = vecs[0:1, :], vecs[1:2, :], vecs[2:3, :]
        b_out, g2, b2 = vecs[3:4, :], vecs[4:5, :], vecs[5:6, :]
        w_in = w_in_ref[l]              # (D, FFN)
        b_in = b_in_ref[l]              # (1, FFN)
        w_out = w_out_ref[l]            # (FFN, D)

        # fused QKV projection (single MXU push)
        qkv = jnp.dot(x, wqkv, preferred_element_type=jnp.float32) + bqkv   # (BS, 3D)
        q = qkv[:, 0:D]
        k = qkv[:, D:2 * D]
        v = qkv[:, 2 * D:3 * D]

        # heads stacked along sublanes: row h*BS+i = query i of head h, columns
        # outside head h's DH-wide block zeroed, so one matmul gives all head scores.
        qhat = jnp.concatenate([q] * H, axis=0) * head_mask                  # (H*BS, D)
        sc = jax.lax.dot_general(
            qhat, k, (((1,), (1,)), ((), ())),
            preferred_element_type=jnp.float32) * scale                      # (H*BS, BS)
        sc = sc + attn_bias
        sc = sc - jnp.max(sc, axis=-1, keepdims=True)
        p = jnp.exp(sc)
        p = p * pl.reciprocal(jnp.sum(p, axis=-1, keepdims=True), approx=True)

        # context for all heads in one matmul, then fold head row-blocks back to (BS, D)
        ctx_all = jnp.dot(p, v, preferred_element_type=jnp.float32) * head_mask  # (H*BS, D)
        ctx = ctx_all[0:BS]
        for h in range(1, H):
            ctx = ctx + ctx_all[h * BS:(h + 1) * BS]                         # (BS, D)

        attn = jnp.dot(ctx, wo, preferred_element_type=jnp.float32) + bo
        x = _layernorm(x + attn, g1, b1)

        hid = jnp.dot(x, w_in, preferred_element_type=jnp.float32) + b_in
        # TODO(synk): HF DistilBERT uses exact erf-GELU; tanh approximation used to
        # guarantee Mosaic EUP lowering.
        hid = jax.nn.gelu(hid, approximate=True)
        ffn = jnp.dot(hid, w_out, preferred_element_type=jnp.float32) + b_out
        x = _layernorm(x + ffn, g2, b2)

    o_ref[...] = x.astype(o_ref.dtype)   # single HBM store for the whole forward


def encoder_forward(attn_bias, head_mask, x, params):
    args = (attn_bias, head_mask, x, params["emb_ln"],
            params["wqkv"], params["bqkv"], params["wo"], params["vecs"],
            params["w_in"], params["b_in"], params["w_out"])

    def full_spec(a):
        nd = a.ndim
        return pl.BlockSpec(a.shape, lambda i, _nd=nd: (0,) * _nd)

    return pl.pallas_call(
        encoder_kernel,
        out_shape=jax.ShapeDtypeStruct((BS, D), jnp.float32),
        grid=(1,),
        in_specs=[full_spec(a) for a in args],
        out_specs=pl.BlockSpec((BS, D), lambda i: (0, 0)),
        compiler_params=pltpu.CompilerParams(dimension_semantics=("arbitrary",)),
    )(*args)


# ---- parameter init (deterministic, synthetic, pre-packed) --------------------
def init_params(key):
    def nrm(k, shape, scale=0.02):
        return jax.random.normal(k, shape, jnp.float32) * scale

    keys = jax.random.split(key, 4 + LAYERS)
    params = {
        "word_emb": nrm(keys[0], (VOCAB, D)),
        "pos_emb": nrm(keys[1], (S, D)),
        "emb_ln": jnp.concatenate(
            [jnp.ones((1, D), jnp.float32), jnp.zeros((1, D), jnp.float32)], axis=0),
    }
    wqkv, bqkv, wo, vecs, w_in, b_in, w_out = [], [], [], [], [], [], []
    for l in range(LAYERS):
        lk = jax.random.split(keys[4 + l], 8)
        wq, wk, wv = nrm(lk[0], (D, D)), nrm(lk[1], (D, D)), nrm(lk[2], (D, D))
        wqkv.append(jnp.concatenate([wq, wk, wv], axis=1))           # (D, 3D) fused QKV
        bqkv.append(jnp.zeros((1, 3 * D), jnp.float32))
        wo.append(nrm(lk[3], (D, D)))
        vecs.append(jnp.stack([                                      # (6, D) packed vectors
            jnp.zeros((D,), jnp.float32),   # bo
            jnp.ones((D,), jnp.float32),    # sa LN gamma
            jnp.zeros((D,), jnp.float32),   # sa LN beta
            jnp.zeros((D,), jnp.float32),   # ffn out bias
            jnp.ones((D,), jnp.float32),    # out LN gamma
            jnp.zeros((D,), jnp.float32),   # out LN beta
        ], axis=0))
        w_in.append(nrm(lk[4], (D, FFN)))
        b_in.append(jnp.zeros((1, FFN), jnp.float32))
        w_out.append(nrm(lk[5], (FFN, D)))
    params.update(
        wqkv=jnp.stack(wqkv), bqkv=jnp.stack(bqkv), wo=jnp.stack(wo),
        vecs=jnp.stack(vecs), w_in=jnp.stack(w_in), b_in=jnp.stack(b_in),
        w_out=jnp.stack(w_out))
    return params


# ---- full TextEncoder forward --------------------------------------------------
@jax.jit
def text_encoder(input_ids, attention_mask, params):
    # embedding gather (JAX glue): word + position embeddings, batch folded to rows
    x = params["word_emb"][input_ids] + params["pos_emb"][None, :, :]
    x = x.reshape(BS, D)

    # additive attention bias: block-diagonal over the batch + key-padding mask,
    # 0 = attend, -1e9 = masked; tiled over heads -> (H*BS, BS)
    keep = attention_mask.astype(jnp.float32)                           # (B, S)
    same_batch = jnp.eye(B, dtype=jnp.float32)
    keep_qk = same_batch[:, None, :, None] * keep[None, None, :, :]     # (B,1,B,S)
    bias = (jnp.broadcast_to(keep_qk, (B, S, B, S)).reshape(BS, BS) - 1.0) * 1e9
    attn_bias = jnp.concatenate([bias] * H, axis=0)                     # (H*BS, BS)

    # head selector: row h*BS+i keeps only head h's DH-wide column block
    row_head = jnp.arange(H * BS) // BS
    col_head = jnp.arange(D) // DH
    head_mask = (row_head[:, None] == col_head[None, :]).astype(jnp.float32)  # (H*BS, D)

    h = encoder_forward(attn_bias, head_mask, x, params)
    # TextEncoder.forward: last_hidden_state[:, target_token_idx=0, :]
    return h.reshape(B, S, D)[:, 0, :]


if __name__ == "__main__":
    key = jax.random.PRNGKey(0)
    pkey, ikey = jax.random.split(key)
    params = init_params(pkey)

    input_ids = jax.random.randint(ikey, (B, S), 0, VOCAB, dtype=jnp.int32)
    attention_mask = jnp.array(
        [[1, 1, 1, 1, 1, 1, 1, 1],
         [1, 1, 1, 1, 1, 1, 0, 0]], dtype=jnp.float32)

    out = text_encoder(input_ids, attention_mask, params)
    jax.block_until_ready(out)
    assert out.shape == (B, D) and out.dtype == jnp.float32
    print("KERNEL_OK")
</pallas_src>

<mosaic_0001>
module attributes {stable_mosaic.version = 11 : i64} {
  func.func @encoder_kernel(%arg0: i32, %arg1: memref<64x16xf32, #tpu.memory_space<vmem>>, %arg2: memref<64x32xf32, #tpu.memory_space<vmem>>, %arg3: memref<16x32xf32, #tpu.memory_space<vmem>>, %arg4: memref<2x32xf32, #tpu.memory_space<vmem>>, %arg5: memref<2x32x96xf32, #tpu.memory_space<vmem>>, %arg6: memref<2x1x96xf32, #tpu.memory_space<vmem>>, %arg7: memref<2x32x32xf32, #tpu.memory_space<vmem>>, %arg8: memref<2x6x32xf32, #tpu.memory_space<vmem>>, %arg9: memref<2x32x64xf32, #tpu.memory_space<vmem>>, %arg10: memref<2x1x64xf32, #tpu.memory_space<vmem>>, %arg11: memref<2x64x32xf32, #tpu.memory_space<vmem>>, %arg12: memref<16x32xf32, #tpu.memory_space<vmem>>) attributes {dimension_semantics = [#tpu.dimension_semantics<arbitrary>], iteration_bounds = array<i64: 1>, scalar_prefetch = 0 : i64, scratch_operands = 0 : i64, tpu.core_type = #tpu.core_type<tc>, window_params = [{pipeline_mode = #tpu.pipeline_mode<synchronous>, transform_indices = @transform_0, window_bounds = array<i64: 64, 16>}, {pipeline_mode = #tpu.pipeline_mode<synchronous>, transform_indices = @transform_1, window_bounds = array<i64: 64, 32>}, {pipeline_mode = #tpu.pipeline_mode<synchronous>, transform_indices = @transform_2, window_bounds = array<i64: 16, 32>}, {pipeline_mode = #tpu.pipeline_mode<synchronous>, transform_indices = @transform_3, window_bounds = array<i64: 2, 32>}, {pipeline_mode = #tpu.pipeline_mode<synchronous>, transform_indices = @transform_4, window_bounds = array<i64: 2, 32, 96>}, {pipeline_mode = #tpu.pipeline_mode<synchronous>, transform_indices = @transform_5, window_bounds = array<i64: 2, 1, 96>}, {pipeline_mode = #tpu.pipeline_mode<synchronous>, transform_indices = @transform_6, window_bounds = array<i64: 2, 32, 32>}, {pipeline_mode = #tpu.pipeline_mode<synchronous>, transform_indices = @transform_7, window_bounds = array<i64: 2, 6, 32>}, {pipeline_mode = #tpu.pipeline_mode<synchronous>, transform_indices = @transform_8, window_bounds = array<i64: 2, 32, 64>}, {pipeline_mode = #tpu.pipeline_mode<synchronous>, transform_indices = @transform_9, window_bounds = array<i64: 2, 1, 64>}, {pipeline_mode = #tpu.pipeline_mode<synchronous>, transform_indices = @transform_10, window_bounds = array<i64: 2, 64, 32>}, {pipeline_mode = #tpu.pipeline_mode<synchronous>, transform_indices = @transform_11, window_bounds = array<i64: 16, 32>}]} {
    %c0 = arith.constant 0 : index
    %c0_0 = arith.constant 0 : index
    %0 = vector.load %arg4[%c0, %c0_0] : memref<2x32xf32, #tpu.memory_space<vmem>>, vector<2x32xf32>
    %c0_1 = arith.constant 0 : index
    %c0_2 = arith.constant 0 : index
    %1 = vector.load %arg3[%c0_1, %c0_2] : memref<16x32xf32, #tpu.memory_space<vmem>>, vector<16x32xf32>
    %2 = vector.extract_strided_slice %0 {offsets = [0, 0], sizes = [1, 32], strides = [1, 1]} : vector<2x32xf32> to vector<1x32xf32>
    %3 = vector.extract_strided_slice %0 {offsets = [1, 0], sizes = [1, 32], strides = [1, 1]} : vector<2x32xf32> to vector<1x32xf32>
    %cst = arith.constant dense<0.000000e+00> : vector<16xf32>
    %4 = vector.multi_reduction <add>, %1, %cst [1] : vector<16x32xf32> to vector<16xf32>
    %5 = vector.shape_cast %4 : vector<16xf32> to vector<16x1xf32>
    %cst_3 = arith.constant 3.200000e+01 : f32
    %6 = vector.broadcast %cst_3 : f32 to vector<16x1xf32>
    %7 = arith.divf %5, %6 : vector<16x1xf32>
    %8 = vector.broadcast %7 : vector<16x1xf32> to vector<16x32xf32>
    %9 = arith.subf %1, %8 : vector<16x32xf32>
    %10 = arith.mulf %9, %9 : vector<16x32xf32>
    %cst_4 = arith.constant dense<0.000000e+00> : vector<16xf32>
    %11 = vector.multi_reduction <add>, %10, %cst_4 [1] : vector<16x32xf32> to vector<16xf32>
    %12 = vector.shape_cast %11 : vector<16xf32> to vector<16x1xf32>
    %cst_5 = arith.constant 3.200000e+01 : f32
    %13 = vector.broadcast %cst_5 : f32 to vector<16x1xf32>
    %14 = arith.divf %12, %13 : vector<16x1xf32>
    %15 = vector.broadcast %7 : vector<16x1xf32> to vector<16x32xf32>
    %16 = arith.subf %1, %15 : vector<16x32xf32>
    %cst_6 = arith.constant 9.99999996E-13 : f32
    %17 = vector.broadcast %cst_6 : f32 to vector<16x1xf32>
    %18 = arith.addf %14, %17 : vector<16x1xf32>
    %19 = math.rsqrt %18 : vector<16x1xf32>
    %20 = vector.broadcast %19 : vector<16x1xf32> to vector<16x32xf32>
    %21 = arith.mulf %16, %20 : vector<16x32xf32>
    %22 = vector.broadcast %2 : vector<1x32xf32> to vector<16x32xf32>
    %23 = arith.mulf %21, %22 : vector<16x32xf32>
    %24 = vector.broadcast %3 : vector<1x32xf32> to vector<16x32xf32>
    %25 = arith.addf %23, %24 : vector<16x32xf32>
    %c0_7 = arith.constant 0 : index
    %c0_8 = arith.constant 0 : index
    %26 = vector.load %arg1[%c0_7, %c0_8] : memref<64x16xf32, #tpu.memory_space<vmem>>, vector<64x16xf32>
    %c0_9 = arith.constant 0 : index
    %c0_10 = arith.constant 0 : index
    %27 = vector.load %arg2[%c0_9, %c0_10] : memref<64x32xf32, #tpu.memory_space<vmem>>, vector<64x32xf32>
    %c0_11 = arith.constant 0 : index
    %c0_12 = arith.constant 0 : index
    %c0_13 = arith.constant 0 : index
    %28 = vector.load %arg5[%c0_11, %c0_12, %c0_13] : memref<2x32x96xf32, #tpu.memory_space<vmem>>, vector<1x32x96xf32>
    %29 = vector.shape_cast %28 : vector<1x32x96xf32> to vector<32x96xf32>
    %c0_14 = arith.constant 0 : index
    %c0_15 = arith.constant 0 : index
    %c0_16 = arith.constant 0 : index
    %30 = vector.load %arg6[%c0_14, %c0_15, %c0_16] : memref<2x1x96xf32, #tpu.memory_space<vmem>>, vector<1x1x96xf32>
    %31 = vector.shape_cast %30 : vector<1x1x96xf32> to vector<1x96xf32>
    %c0_17 = arith.constant 0 : index
    %c0_18 = arith.constant 0 : index
    %c0_19 = arith.constant 0 : index
    %32 = vector.load %arg7[%c0_17, %c0_18, %c0_19] : memref<2x32x32xf32, #tpu.memory_space<vmem>>, vector<1x32x32xf32>
    %33 = vector.shape_cast %32 : vector<1x32x32xf32> to vector<32x32xf32>
    %c0_20 = arith.constant 0 : index
    %c0_21 = arith.constant 0 : index
    %c0_22 = arith.constant 0 : index
    %34 = vector.load %arg8[%c0_20, %c0_21, %c0_22] : memref<2x6x32xf32, #tpu.memory_space<vmem>>, vector<1x6x32xf32>
    %35 = vector.shape_cast %34 : vector<1x6x32xf32> to vector<6x32xf32>
    %36 = vector.extract_strided_slice %35 {offsets = [0, 0], sizes = [1, 32], strides = [1, 1]} : vector<6x32xf32> to vector<1x32xf32>
    %37 = vector.extract_strided_slice %35 {offsets = [1, 0], sizes = [1, 32], strides = [1, 1]} : vector<6x32xf32> to vector<1x32xf32>
    %38 = vector.extract_strided_slice %35 {offsets = [2, 0], sizes = [1, 32], strides = [1, 1]} : vector<6x32xf32> to vector<1x32xf32>
    %39 = vector.extract_strided_slice %35 {offsets = [3, 0], sizes = [1, 32], strides = [1, 1]} : vector<6x32xf32> to vector<1x32xf32>
    %40 = vector.extract_strided_slice %35 {offsets = [4, 0], sizes = [1, 32], strides = [1, 1]} : vector<6x32xf32> to vector<1x32xf32>
    %41 = vector.extract_strided_slice %35 {offsets = [5, 0], sizes = [1, 32], strides = [1, 1]} : vector<6x32xf32> to vector<1x32xf32>
    %c0_23 = arith.constant 0 : index
    %c0_24 = arith.constant 0 : index
    %c0_25 = arith.constant 0 : index
    %42 = vector.load %arg9[%c0_23, %c0_24, %c0_25] : memref<2x32x64xf32, #tpu.memory_space<vmem>>, vector<1x32x64xf32>
    %43 = vector.shape_cast %42 : vector<1x32x64xf32> to vector<32x64xf32>
    %c0_26 = arith.constant 0 : index
    %c0_27 = arith.constant 0 : index
    %c0_28 = arith.constant 0 : index
    %44 = vector.load %arg10[%c0_26, %c0_27, %c0_28] : memref<2x1x64xf32, #tpu.memory_space<vmem>>, vector<1x1x64xf32>
    %45 = vector.shape_cast %44 : vector<1x1x64xf32> to vector<1x64xf32>
    %c0_29 = arith.constant 0 : index
    %c0_30 = arith.constant 0 : index
    %c0_31 = arith.constant 0 : index
    %46 = vector.load %arg11[%c0_29, %c0_30, %c0_31] : memref<2x64x32xf32, #tpu.memory_space<vmem>>, vector<1x64x32xf32>
    %47 = vector.shape_cast %46 : vector<1x64x32xf32> to vector<64x32xf32>
    %cst_32 = arith.constant dense<0.000000e+00> : vector<16x96xf32>
    %48 = tpu.matmul %25, %29, %cst_32 {dimension_numbers = #tpu.dot_dimension_numbers<[1], [0], [0], [1], [0, 0, 1, 1], [], []>} : vector<16x32xf32>, vector<32x96xf32>, vector<16x96xf32> -> vector<16x96xf32>
    %49 = vector.broadcast %31 : vector<1x96xf32> to vector<16x96xf32>
    %50 = arith.addf %48, %49 : vector<16x96xf32>
    %51 = vector.extract_strided_slice %50 {offsets = [0, 0], sizes = [16, 32], strides = [1, 1]} : vector<16x96xf32> to vector<16x32xf32>
    %52 = vector.extract_strided_slice %50 {offsets = [0, 32], sizes = [16, 32], strides = [1, 1]} : vector<16x96xf32> to vector<16x32xf32>
    %53 = vector.extract_strided_slice %50 {offsets = [0, 64], sizes = [16, 32], strides = [1, 1]} : vector<16x96xf32> to vector<16x32xf32>
    %54 = tpu.concatenate %51, %51, %51, %51 in 0 : vector<16x32xf32>, vector<16x32xf32>, vector<16x32xf32>, vector<16x32xf32> -> vector<64x32xf32>
    %55 = arith.mulf %54, %27 : vector<64x32xf32>
    %cst_33 = arith.constant dense<0.000000e+00> : vector<64x16xf32>
    %56 = tpu.matmul %55, %52, %cst_33 {dimension_numbers = #tpu.dot_dimension_numbers<[1], [1], [0], [0], [0, 0, 1, 0], [], []>} : vector<64x32xf32>, vector<16x32xf32>, vector<64x16xf32> -> vector<64x16xf32>
    %cst_34 = arith.constant 0.353553385 : f32
    %57 = vector.broadcast %cst_34 : f32 to vector<64x16xf32>
    %58 = arith.mulf %56, %57 : vector<64x16xf32>
    %59 = arith.addf %58, %26 : vector<64x16xf32>
    %cst_35 = arith.constant dense<0xFF800000> : vector<64xf32>
    %60 = vector.multi_reduction <maximumf>, %59, %cst_35 [1] : vector<64x16xf32> to vector<64xf32>
    %61 = vector.shape_cast %60 : vector<64xf32> to vector<64x1xf32>
    %62 = vector.broadcast %61 : vector<64x1xf32> to vector<64x16xf32>
    %63 = arith.subf %59, %62 : vector<64x16xf32>
    %64 = math.exp %63 : vector<64x16xf32>
    %cst_36 = arith.constant dense<0.000000e+00> : vector<64xf32>
    %65 = vector.multi_reduction <add>, %64, %cst_36 [1] : vector<64x16xf32> to vector<64xf32>
    %66 = vector.shape_cast %65 : vector<64xf32> to vector<64x1xf32>
    %67 = tpu.reciprocal %66 {approx = true} : vector<64x1xf32> -> vector<64x1xf32>
    %68 = vector.broadcast %67 : vector<64x1xf32> to vector<64x16xf32>
    %69 = arith.mulf %64, %68 : vector<64x16xf32>
    %cst_37 = arith.constant dense<0.000000e+00> : vector<64x32xf32>
    %70 = tpu.matmul %69, %53, %cst_37 {dimension_numbers = #tpu.dot_dimension_numbers<[1], [0], [0], [1], [0, 0, 1, 1], [], []>} : vector<64x16xf32>, vector<16x32xf32>, vector<64x32xf32> -> vector<64x32xf32>
    %71 = arith.mulf %70, %27 : vector<64x32xf32>
    %72 = vector.extract_strided_slice %71 {offsets = [0, 0], sizes = [16, 32], strides = [1, 1]} : vector<64x32xf32> to vector<16x32xf32>
    %73 = vector.extract_strided_slice %71 {offsets = [16, 0], sizes = [16, 32], strides = [1, 1]} : vector<64x32xf32> to vector<16x32xf32>
    %74 = arith.addf %72, %73 : vector<16x32xf32>
    %75 = vector.extract_strided_slice %71 {offsets = [32, 0], sizes = [16, 32], strides = [1, 1]} : vector<64x32xf32> to vector<16x32xf32>
    %76 = arith.addf %74, %75 : vector<16x32xf32>
    %77 = vector.extract_strided_slice %71 {offsets = [48, 0], sizes = [16, 32], strides = [1, 1]} : vector<64x32xf32> to vector<16x32xf32>
    %78 = arith.addf %76, %77 : vector<16x32xf32>
    %cst_38 = arith.constant dense<0.000000e+00> : vector<16x32xf32>
    %79 = tpu.matmul %78, %33, %cst_38 {dimension_numbers = #tpu.dot_dimension_numbers<[1], [0], [0], [1], [0, 0, 1, 1], [], []>} : vector<16x32xf32>, vector<32x32xf32>, vector<16x32xf32> -> vector<16x32xf32>
    %80 = vector.broadcast %36 : vector<1x32xf32> to vector<16x32xf32>
    %81 = arith.addf %79, %80 : vector<16x32xf32>
    %82 = arith.addf %25, %81 : vector<16x32xf32>
    %cst_39 = arith.constant dense<0.000000e+00> : vector<16xf32>
    %83 = vector.multi_reduction <add>, %82, %cst_39 [1] : vector<16x32xf32> to vector<16xf32>
    %84 = vector.shape_cast %83 : vector<16xf32> to vector<16x1xf32>
    %cst_40 = arith.constant 3.200000e+01 : f32
    %85 = vector.broadcast %cst_40 : f32 to vector<16x1xf32>
    %86 = arith.divf %84, %85 : vector<16x1xf32>
    %87 = vector.broadcast %86 : vector<16x1xf32> to vector<16x32xf32>
    %88 = arith.subf %82, %87 : vector<16x32xf32>
    %89 = arith.mulf %88, %88 : vector<16x32xf32>
    %cst_41 = arith.constant dense<0.000000e+00> : vector<16xf32>
    %90 = vector.multi_reduction <add>, %89, %cst_41 [1] : vector<16x32xf32> to vector<16xf32>
    %91 = vector.shape_cast %90 : vector<16xf32> to vector<16x1xf32>
    %cst_42 = arith.constant 3.200000e+01 : f32
    %92 = vector.broadcast %cst_42 : f32 to vector<16x1xf32>
    %93 = arith.divf %91, %92 : vector<16x1xf32>
    %94 = vector.broadcast %86 : vector<16x1xf32> to vector<16x32xf32>
    %95 = arith.subf %82, %94 : vector<16x32xf32>
    %cst_43 = arith.constant 9.99999996E-13 : f32
    %96 = vector.broadcast %cst_43 : f32 to vector<16x1xf32>
    %97 = arith.addf %93, %96 : vector<16x1xf32>
    %98 = math.rsqrt %97 : vector<16x1xf32>
    %99 = vector.broadcast %98 : vector<16x1xf32> to vector<16x32xf32>
    %100 = arith.mulf %95, %99 : vector<16x32xf32>
    %101 = vector.broadcast %37 : vector<1x32xf32> to vector<16x32xf32>
    %102 = arith.mulf %100, %101 : vector<16x32xf32>
    %103 = vector.broadcast %38 : vector<1x32xf32> to vector<16x32xf32>
    %104 = arith.addf %102, %103 : vector<16x32xf32>
    %cst_44 = arith.constant dense<0.000000e+00> : vector<16x64xf32>
    %105 = tpu.matmul %104, %43, %cst_44 {dimension_numbers = #tpu.dot_dimension_numbers<[1], [0], [0], [1], [0, 0, 1, 1], [], []>} : vector<16x32xf32>, vector<32x64xf32>, vector<16x64xf32> -> vector<16x64xf32>
    %106 = vector.broadcast %45 : vector<1x64xf32> to vector<16x64xf32>
    %107 = arith.addf %105, %106 : vector<16x64xf32>
    %108 = arith.mulf %107, %107 : vector<16x64xf32>
    %109 = arith.mulf %107, %108 : vector<16x64xf32>
    %cst_45 = arith.constant 4.471500e-02 : f32
    %110 = vector.broadcast %cst_45 : f32 to vector<16x64xf32>
    %111 = arith.mulf %110, %109 : vector<16x64xf32>
    %112 = arith.addf %107, %111 : vector<16x64xf32>
    %cst_46 = arith.constant 0.797884583 : f32
    %113 = vector.broadcast %cst_46 : f32 to vector<16x64xf32>
    %114 = arith.mulf %113, %112 : vector<16x64xf32>
    %115 = math.tanh %114 : vector<16x64xf32>
    %cst_47 = arith.constant 1.000000e+00 : f32
    %116 = vector.broadcast %cst_47 : f32 to vector<16x64xf32>
    %117 = arith.addf %116, %115 : vector<16x64xf32>
    %cst_48 = arith.constant 5.000000e-01 : f32
    %118 = vector.broadcast %cst_48 : f32 to vector<16x64xf32>
    %119 = arith.mulf %118, %117 : vector<16x64xf32>
    %120 = arith.mulf %107, %119 : vector<16x64xf32>
    %cst_49 = arith.constant dense<0.000000e+00> : vector<16x32xf32>
    %121 = tpu.matmul %120, %47, %cst_49 {dimension_numbers = #tpu.dot_dimension_numbers<[1], [0], [0], [1], [0, 0, 1, 1], [], []>} : vector<16x64xf32>, vector<64x32xf32>, vector<16x32xf32> -> vector<16x32xf32>
    %122 = vector.broadcast %39 : vector<1x32xf32> to vector<16x32xf32>
    %123 = arith.addf %121, %122 : vector<16x32xf32>
    %124 = arith.addf %104, %123 : vector<16x32xf32>
    %cst_50 = arith.constant dense<0.000000e+00> : vector<16xf32>
    %125 = vector.multi_reduction <add>, %124, %cst_50 [1] : vector<16x32xf32> to vector<16xf32>
    %126 = vector.shape_cast %125 : vector<16xf32> to vector<16x1xf32>
    %cst_51 = arith.constant 3.200000e+01 : f32
    %127 = vector.broadcast %cst_51 : f32 to vector<16x1xf32>
    %128 = arith.divf %126, %127 : vector<16x1xf32>
    %129 = vector.broadcast %128 : vector<16x1xf32> to vector<16x32xf32>
    %130 = arith.subf %124, %129 : vector<16x32xf32>
    %131 = arith.mulf %130, %130 : vector<16x32xf32>
    %cst_52 = arith.constant dense<0.000000e+00> : vector<16xf32>
    %132 = vector.multi_reduction <add>, %131, %cst_52 [1] : vector<16x32xf32> to vector<16xf32>
    %133 = vector.shape_cast %132 : vector<16xf32> to vector<16x1xf32>
    %cst_53 = arith.constant 3.200000e+01 : f32
    %134 = vector.broadcast %cst_53 : f32 to vector<16x1xf32>
    %135 = arith.divf %133, %134 : vector<16x1xf32>
    %136 = vector.broadcast %128 : vector<16x1xf32> to vector<16x32xf32>
    %137 = arith.subf %124, %136 : vector<16x32xf32>
    %cst_54 = arith.constant 9.99999996E-13 : f32
    %138 = vector.broadcast %cst_54 : f32 to vector<16x1xf32>
    %139 = arith.addf %135, %138 : vector<16x1xf32>
    %140 = math.rsqrt %139 : vector<16x1xf32>
    %141 = vector.broadcast %140 : vector<16x1xf32> to vector<16x32xf32>
    %142 = arith.mulf %137, %141 : vector<16x32xf32>
    %143 = vector.broadcast %40 : vector<1x32xf32> to vector<16x32xf32>
    %144 = arith.mulf %142, %143 : vector<16x32xf32>
    %145 = vector.broadcast %41 : vector<1x32xf32> to vector<16x32xf32>
    %146 = arith.addf %144, %145 : vector<16x32xf32>
    %c1 = arith.constant 1 : index
    %c0_55 = arith.constant 0 : index
    %c0_56 = arith.constant 0 : index
    %147 = vector.load %arg5[%c1, %c0_55, %c0_56] : memref<2x32x96xf32, #tpu.memory_space<vmem>>, vector<1x32x96xf32>
    %148 = vector.shape_cast %147 : vector<1x32x96xf32> to vector<32x96xf32>
    %c1_57 = arith.constant 1 : index
    %c0_58 = arith.constant 0 : index
    %c0_59 = arith.constant 0 : index
    %149 = vector.load %arg6[%c1_57, %c0_58, %c0_59] : memref<2x1x96xf32, #tpu.memory_space<vmem>>, vector<1x1x96xf32>
    %150 = vector.shape_cast %149 : vector<1x1x96xf32> to vector<1x96xf32>
    %c1_60 = arith.constant 1 : index
    %c0_61 = arith.constant 0 : index
    %c0_62 = arith.constant 0 : index
    %151 = vector.load %arg7[%c1_60, %c0_61, %c0_62] : memref<2x32x32xf32, #tpu.memory_space<vmem>>, vector<1x32x32xf32>
    %152 = vector.shape_cast %151 : vector<1x32x32xf32> to vector<32x32xf32>
    %c1_63 = arith.constant 1 : index
    %c0_64 = arith.constant 0 : index
    %c0_65 = arith.constant 0 : index
    %153 = vector.load %arg8[%c1_63, %c0_64, %c0_65] : memref<2x6x32xf32, #tpu.memory_space<vmem>>, vector<1x6x32xf32>
    %154 = vector.shape_cast %153 : vector<1x6x32xf32> to vector<6x32xf32>
    %155 = vector.extract_strided_slice %154 {offsets = [0, 0], sizes = [1, 32], strides = [1, 1]} : vector<6x32xf32> to vector<1x32xf32>
    %156 = vector.extract_strided_slice %154 {offsets = [1, 0], sizes = [1, 32], strides = [1, 1]} : vector<6x32xf32> to vector<1x32xf32>
    %157 = vector.extract_strided_slice %154 {offsets = [2, 0], sizes = [1, 32], strides = [1, 1]} : vector<6x32xf32> to vector<1x32xf32>
    %158 = vector.extract_strided_slice %154 {offsets = [3, 0], sizes = [1, 32], strides = [1, 1]} : vector<6x32xf32> to vector<1x32xf32>
    %159 = vector.extract_strided_slice %154 {offsets = [4, 0], sizes = [1, 32], strides = [1, 1]} : vector<6x32xf32> to vector<1x32xf32>
    %160 = vector.extract_strided_slice %154 {offsets = [5, 0], sizes = [1, 32], strides = [1, 1]} : vector<6x32xf32> to vector<1x32xf32>
    %c1_66 = arith.constant 1 : index
    %c0_67 = arith.constant 0 : index
    %c0_68 = arith.constant 0 : index
    %161 = vector.load %arg9[%c1_66, %c0_67, %c0_68] : memref<2x32x64xf32, #tpu.memory_space<vmem>>, vector<1x32x64xf32>
    %162 = vector.shape_cast %161 : vector<1x32x64xf32> to vector<32x64xf32>
    %c1_69 = arith.constant 1 : index
    %c0_70 = arith.constant 0 : index
    %c0_71 = arith.constant 0 : index
    %163 = vector.load %arg10[%c1_69, %c0_70, %c0_71] : memref<2x1x64xf32, #tpu.memory_space<vmem>>, vector<1x1x64xf32>
    %164 = vector.shape_cast %163 : vector<1x1x64xf32> to vector<1x64xf32>
    %c1_72 = arith.constant 1 : index
    %c0_73 = arith.constant 0 : index
    %c0_74 = arith.constant 0 : index
    %165 = vector.load %arg11[%c1_72, %c0_73, %c0_74] : memref<2x64x32xf32, #tpu.memory_space<vmem>>, vector<1x64x32xf32>
    %166 = vector.shape_cast %165 : vector<1x64x32xf32> to vector<64x32xf32>
    %cst_75 = arith.constant dense<0.000000e+00> : vector<16x96xf32>
    %167 = tpu.matmul %146, %148, %cst_75 {dimension_numbers = #tpu.dot_dimension_numbers<[1], [0], [0], [1], [0, 0, 1, 1], [], []>} : vector<16x32xf32>, vector<32x96xf32>, vector<16x96xf32> -> vector<16x96xf32>
    %168 = vector.broadcast %150 : vector<1x96xf32> to vector<16x96xf32>
    %169 = arith.addf %167, %168 : vector<16x96xf32>
    %170 = vector.extract_strided_slice %169 {offsets = [0, 0], sizes = [16, 32], strides = [1, 1]} : vector<16x96xf32> to vector<16x32xf32>
    %171 = vector.extract_strided_slice %169 {offsets = [0, 32], sizes = [16, 32], strides = [1, 1]} : vector<16x96xf32> to vector<16x32xf32>
    %172 = vector.extract_strided_slice %169 {offsets = [0, 64], sizes = [16, 32], strides = [1, 1]} : vector<16x96xf32> to vector<16x32xf32>
    %173 = tpu.concatenate %170, %170, %170, %170 in 0 : vector<16x32xf32>, vector<16x32xf32>, vector<16x32xf32>, vector<16x32xf32> -> vector<64x32xf32>
    %174 = arith.mulf %173, %27 : vector<64x32xf32>
    %cst_76 = arith.constant dense<0.000000e+00> : vector<64x16xf32>
    %175 = tpu.matmul %174, %171, %cst_76 {dimension_numbers = #tpu.dot_dimension_numbers<[1], [1], [0], [0], [0, 0, 1, 0], [], []>} : vector<64x32xf32>, vector<16x32xf32>, vector<64x16xf32> -> vector<64x16xf32>
    %cst_77 = arith.constant 0.353553385 : f32
    %176 = vector.broadcast %cst_77 : f32 to vector<64x16xf32>
    %177 = arith.mulf %175, %176 : vector<64x16xf32>
    %178 = arith.addf %177, %26 : vector<64x16xf32>
    %cst_78 = arith.constant dense<0xFF800000> : vector<64xf32>
    %179 = vector.multi_reduction <maximumf>, %178, %cst_78 [1] : vector<64x16xf32> to vector<64xf32>
    %180 = vector.shape_cast %179 : vector<64xf32> to vector<64x1xf32>
    %181 = vector.broadcast %180 : vector<64x1xf32> to vector<64x16xf32>
    %182 = arith.subf %178, %181 : vector<64x16xf32>
    %183 = math.exp %182 : vector<64x16xf32>
    %cst_79 = arith.constant dense<0.000000e+00> : vector<64xf32>
    %184 = vector.multi_reduction <add>, %183, %cst_79 [1] : vector<64x16xf32> to vector<64xf32>
    %185 = vector.shape_cast %184 : vector<64xf32> to vector<64x1xf32>
    %186 = tpu.reciprocal %185 {approx = true} : vector<64x1xf32> -> vector<64x1xf32>
    %187 = vector.broadcast %186 : vector<64x1xf32> to vector<64x16xf32>
    %188 = arith.mulf %183, %187 : vector<64x16xf32>
    %cst_80 = arith.constant dense<0.000000e+00> : vector<64x32xf32>
    %189 = tpu.matmul %188, %172, %cst_80 {dimension_numbers = #tpu.dot_dimension_numbers<[1], [0], [0], [1], [0, 0, 1, 1], [], []>} : vector<64x16xf32>, vector<16x32xf32>, vector<64x32xf32> -> vector<64x32xf32>
    %190 = arith.mulf %189, %27 : vector<64x32xf32>
    %191 = vector.extract_strided_slice %190 {offsets = [0, 0], sizes = [16, 32], strides = [1, 1]} : vector<64x32xf32> to vector<16x32xf32>
    %192 = vector.extract_strided_slice %190 {offsets = [16, 0], sizes = [16, 32], strides = [1, 1]} : vector<64x32xf32> to vector<16x32xf32>
    %193 = arith.addf %191, %192 : vector<16x32xf32>
    %194 = vector.extract_strided_slice %190 {offsets = [32, 0], sizes = [16, 32], strides = [1, 1]} : vector<64x32xf32> to vector<16x32xf32>
    %195 = arith.addf %193, %194 : vector<16x32xf32>
    %196 = vector.extract_strided_slice %190 {offsets = [48, 0], sizes = [16, 32], strides = [1, 1]} : vector<64x32xf32> to vector<16x32xf32>
    %197 = arith.addf %195, %196 : vector<16x32xf32>
    %cst_81 = arith.constant dense<0.000000e+00> : vector<16x32xf32>
    %198 = tpu.matmul %197, %152, %cst_81 {dimension_numbers = #tpu.dot_dimension_numbers<[1], [0], [0], [1], [0, 0, 1, 1], [], []>} : vector<16x32xf32>, vector<32x32xf32>, vector<16x32xf32> -> vector<16x32xf32>
    %199 = vector.broadcast %155 : vector<1x32xf32> to vector<16x32xf32>
    %200 = arith.addf %198, %199 : vector<16x32xf32>
    %201 = arith.addf %146, %200 : vector<16x32xf32>
    %cst_82 = arith.constant dense<0.000000e+00> : vector<16xf32>
    %202 = vector.multi_reduction <add>, %201, %cst_82 [1] : vector<16x32xf32> to vector<16xf32>
    %203 = vector.shape_cast %202 : vector<16xf32> to vector<16x1xf32>
    %cst_83 = arith.constant 3.200000e+01 : f32
    %204 = vector.broadcast %cst_83 : f32 to vector<16x1xf32>
    %205 = arith.divf %203, %204 : vector<16x1xf32>
    %206 = vector.broadcast %205 : vector<16x1xf32> to vector<16x32xf32>
    %207 = arith.subf %201, %206 : vector<16x32xf32>
    %208 = arith.mulf %207, %207 : vector<16x32xf32>
    %cst_84 = arith.constant dense<0.000000e+00> : vector<16xf32>
    %209 = vector.multi_reduction <add>, %208, %cst_84 [1] : vector<16x32xf32> to vector<16xf32>
    %210 = vector.shape_cast %209 : vector<16xf32> to vector<16x1xf32>
    %cst_85 = arith.constant 3.200000e+01 : f32
    %211 = vector.broadcast %cst_85 : f32 to vector<16x1xf32>
    %212 = arith.divf %210, %211 : vector<16x1xf32>
    %213 = vector.broadcast %205 : vector<16x1xf32> to vector<16x32xf32>
    %214 = arith.subf %201, %213 : vector<16x32xf32>
    %cst_86 = arith.constant 9.99999996E-13 : f32
    %215 = vector.broadcast %cst_86 : f32 to vector<16x1xf32>
    %216 = arith.addf %212, %215 : vector<16x1xf32>
    %217 = math.rsqrt %216 : vector<16x1xf32>
    %218 = vector.broadcast %217 : vector<16x1xf32> to vector<16x32xf32>
    %219 = arith.mulf %214, %218 : vector<16x32xf32>
    %220 = vector.broadcast %156 : vector<1x32xf32> to vector<16x32xf32>
    %221 = arith.mulf %219, %220 : vector<16x32xf32>
    %222 = vector.broadcast %157 : vector<1x32xf32> to vector<16x32xf32>
    %223 = arith.addf %221, %222 : vector<16x32xf32>
    %cst_87 = arith.constant dense<0.000000e+00> : vector<16x64xf32>
    %224 = tpu.matmul %223, %162, %cst_87 {dimension_numbers = #tpu.dot_dimension_numbers<[1], [0], [0], [1], [0, 0, 1, 1], [], []>} : vector<16x32xf32>, vector<32x64xf32>, vector<16x64xf32> -> vector<16x64xf32>
    %225 = vector.broadcast %164 : vector<1x64xf32> to vector<16x64xf32>
    %226 = arith.addf %224, %225 : vector<16x64xf32>
    %227 = arith.mulf %226, %226 : vector<16x64xf32>
    %228 = arith.mulf %226, %227 : vector<16x64xf32>
    %cst_88 = arith.constant 4.471500e-02 : f32
    %229 = vector.broadcast %cst_88 : f32 to vector<16x64xf32>
    %230 = arith.mulf %229, %228 : vector<16x64xf32>
    %231 = arith.addf %226, %230 : vector<16x64xf32>
    %cst_89 = arith.constant 0.797884583 : f32
    %232 = vector.broadcast %cst_89 : f32 to vector<16x64xf32>
    %233 = arith.mulf %232, %231 : vector<16x64xf32>
    %234 = math.tanh %233 : vector<16x64xf32>
    %cst_90 = arith.constant 1.000000e+00 : f32
    %235 = vector.broadcast %cst_90 : f32 to vector<16x64xf32>
    %236 = arith.addf %235, %234 : vector<16x64xf32>
    %cst_91 = arith.constant 5.000000e-01 : f32
    %237 = vector.broadcast %cst_91 : f32 to vector<16x64xf32>
    %238 = arith.mulf %237, %236 : vector<16x64xf32>
    %239 = arith.mulf %226, %238 : vector<16x64xf32>
    %cst_92 = arith.constant dense<0.000000e+00> : vector<16x32xf32>
    %240 = tpu.matmul %239, %166, %cst_92 {dimension_numbers = #tpu.dot_dimension_numbers<[1], [0], [0], [1], [0, 0, 1, 1], [], []>} : vector<16x64xf32>, vector<64x32xf32>, vector<16x32xf32> -> vector<16x32xf32>
    %241 = vector.broadcast %158 : vector<1x32xf32> to vector<16x32xf32>
    %242 = arith.addf %240, %241 : vector<16x32xf32>
    %243 = arith.addf %223, %242 : vector<16x32xf32>
    %cst_93 = arith.constant dense<0.000000e+00> : vector<16xf32>
    %244 = vector.multi_reduction <add>, %243, %cst_93 [1] : vector<16x32xf32> to vector<16xf32>
    %245 = vector.shape_cast %244 : vector<16xf32> to vector<16x1xf32>
    %cst_94 = arith.constant 3.200000e+01 : f32
    %246 = vector.broadcast %cst_94 : f32 to vector<16x1xf32>
    %247 = arith.divf %245, %246 : vector<16x1xf32>
    %248 = vector.broadcast %247 : vector<16x1xf32> to vector<16x32xf32>
    %249 = arith.subf %243, %248 : vector<16x32xf32>
    %250 = arith.mulf %249, %249 : vector<16x32xf32>
    %cst_95 = arith.constant dense<0.000000e+00> : vector<16xf32>
    %251 = vector.multi_reduction <add>, %250, %cst_95 [1] : vector<16x32xf32> to vector<16xf32>
    %252 = vector.shape_cast %251 : vector<16xf32> to vector<16x1xf32>
    %cst_96 = arith.constant 3.200000e+01 : f32
    %253 = vector.broadcast %cst_96 : f32 to vector<16x1xf32>
    %254 = arith.divf %252, %253 : vector<16x1xf32>
    %255 = vector.broadcast %247 : vector<16x1xf32> to vector<16x32xf32>
    %256 = arith.subf %243, %255 : vector<16x32xf32>
    %cst_97 = arith.constant 9.99999996E-13 : f32
    %257 = vector.broadcast %cst_97 : f32 to vector<16x1xf32>
    %258 = arith.addf %254, %257 : vector<16x1xf32>
    %259 = math.rsqrt %258 : vector<16x1xf32>
    %260 = vector.broadcast %259 : vector<16x1xf32> to vector<16x32xf32>
    %261 = arith.mulf %256, %260 : vector<16x32xf32>
    %262 = vector.broadcast %159 : vector<1x32xf32> to vector<16x32xf32>
    %263 = arith.mulf %261, %262 : vector<16x32xf32>
    %264 = vector.broadcast %160 : vector<1x32xf32> to vector<16x32xf32>
    %265 = arith.addf %263, %264 : vector<16x32xf32>
    %c0_98 = arith.constant 0 : index
    %c0_99 = arith.constant 0 : index
    %266 = vector.load %arg12[%c0_98, %c0_99] : memref<16x32xf32, #tpu.memory_space<vmem>>, vector<16x32xf32>
    tpu.vector_store %arg12[%c0_98, %c0_99], %265 {strides = array<i32>} : memref<16x32xf32, #tpu.memory_space<vmem>>, vector<16x32xf32>,
    return
  }
  func.func @transform_0(%arg0: i32) -> (i32, i32) {
    %c0_i32 = arith.constant 0 : i32
    %c0_i32_0 = arith.constant 0 : i32
    %c0_i32_1 = arith.constant 0 : i32
    return %c0_i32, %c0_i32_0 : i32, i32
  }
  func.func @transform_1(%arg0: i32) -> (i32, i32) {
    %c0_i32 = arith.constant 0 : i32
    %c0_i32_0 = arith.constant 0 : i32
    %c0_i32_1 = arith.constant 0 : i32
    return %c0_i32, %c0_i32_0 : i32, i32
  }
  func.func @transform_2(%arg0: i32) -> (i32, i32) {
    %c0_i32 = arith.constant 0 : i32
    %c0_i32_0 = arith.constant 0 : i32
    %c0_i32_1 = arith.constant 0 : i32
    return %c0_i32, %c0_i32_0 : i32, i32
  }
  func.func @transform_3(%arg0: i32) -> (i32, i32) {
    %c0_i32 = arith.constant 0 : i32
    %c0_i32_0 = arith.constant 0 : i32
    %c0_i32_1 = arith.constant 0 : i32
    return %c0_i32, %c0_i32_0 : i32, i32
  }
  func.func @transform_4(%arg0: i32) -> (i32, i32, i32) {
    %c0_i32 = arith.constant 0 : i32
    %c0_i32_0 = arith.constant 0 : i32
    %c0_i32_1 = arith.constant 0 : i32
    %c0_i32_2 = arith.constant 0 : i32
    return %c0_i32, %c0_i32_0, %c0_i32_1 : i32, i32, i32
  }
  func.func @transform_5(%arg0: i32) -> (i32, i32, i32) {
    %c0_i32 = arith.constant 0 : i32
    %c0_i32_0 = arith.constant 0 : i32
    %c0_i32_1 = arith.constant 0 : i32
    %c0_i32_2 = arith.constant 0 : i32
    return %c0_i32, %c0_i32_0, %c0_i32_1 : i32, i32, i32
  }
  func.func @transform_6(%arg0: i32) -> (i32, i32, i32) {
    %c0_i32 = arith.constant 0 : i32
    %c0_i32_0 = arith.constant 0 : i32
    %c0_i32_1 = arith.constant 0 : i32
    %c0_i32_2 = arith.constant 0 : i32
    return %c0_i32, %c0_i32_0, %c0_i32_1 : i32, i32, i32
  }
  func.func @transform_7(%arg0: i32) -> (i32, i32, i32) {
    %c0_i32 = arith.constant 0 : i32
    %c0_i32_0 = arith.constant 0 : i32
    %c0_i32_1 = arith.constant 0 : i32
    %c0_i32_2 = arith.constant 0 : i32
    return %c0_i32, %c0_i32_0, %c0_i32_1 : i32, i32, i32
  }
  func.func @transform_8(%arg0: i32) -> (i32, i32, i32) {
    %c0_i32 = arith.constant 0 : i32
    %c0_i32_0 = arith.constant 0 : i32
    %c0_i32_1 = arith.constant 0 : i32
    %c0_i32_2 = arith.constant 0 : i32
    return %c0_i32, %c0_i32_0, %c0_i32_1 : i32, i32, i32
  }
  func.func @transform_9(%arg0: i32) -> (i32, i32, i32) {
    %c0_i32 = arith.constant 0 : i32
    %c0_i32_0 = arith.constant 0 : i32
    %c0_i32_1 = arith.constant 0 : i32
    %c0_i32_2 = arith.constant 0 : i32
    return %c0_i32, %c0_i32_0, %c0_i32_1 : i32, i32, i32
  }
  func.func @transform_10(%arg0: i32) -> (i32, i32, i32) {
    %c0_i32 = arith.constant 0 : i32
    %c0_i32_0 = arith.constant 0 : i32
    %c0_i32_1 = arith.constant 0 : i32
    %c0_i32_2 = arith.constant 0 : i32
    return %c0_i32, %c0_i32_0, %c0_i32_1 : i32, i32, i32
  }
  func.func @transform_11(%arg0: i32) -> (i32, i32) {
    %c0_i32 = arith.constant 0 : i32
    %c0_i32_0 = arith.constant 0 : i32
    %c0_i32_1 = arith.constant 0 : i32
    return %c0_i32, %c0_i32_0 : i32, i32
  }
}

</mosaic_0001>

<bundles_post_ra>
// kernel: text_encoder.1
= control target key start
LH: loop header
LB: loop body
LE: loop exit
PB: predicated region body
PF: predicated region fallthrough
CT: control target
= control target key end

     0   :  { %vm41_vm0 = vcmask 261120   ;;  %v69_v22 = vlaneseq  ;;  %s2407_s14 = smov 96   ;;  %vm370_vm2 = vcmask 130048   ;;  %vm842_vm3 = vcmask 523264   ;;  %s2972_s2 = inlined_call_operand.vmem [shape: f32[16,32], index: 2, kind: input, shape index: {}]   ;;  %s2973_s4 = inlined_call_operand.vmem [shape: f32[2,32,96], index: 4, kind: input, shape index: {}]   ;;  %s2974_s3 = inlined_call_operand.vmem [shape: f32[2,32], index: 3, kind: input, shape index: {}]   ;;  %s2975_s5 = inlined_call_operand.vmem [shape: f32[2,1,96], index: 5, kind: input, shape index: {}]   ;;  %s2976_s1 = inlined_call_operand.vmem [shape: f32[64,32], index: 1, kind: input, shape index: {}]   ;;  %s2977_s0 = inlined_call_operand.vmem [shape: f32[64,16], index: 0, kind: input, shape index: {}]   ;;  %s2978_s6 = inlined_call_operand.vmem [shape: f32[2,32,32], index: 6, kind: input, shape index: {}]   ;;  %s2979_s7 = inlined_call_operand.vmem [shape: f32[2,6,32], index: 7, kind: input, shape index: {}]   ;;  %s2980_s8 = inlined_call_operand.vmem [shape: f32[2,32,64], index: 8, kind: input, shape index: {}]   ;;  %s2981_s10 = inlined_call_operand.vmem [shape: f32[2,64,32], index: 10, kind: input, shape index: {}]   ;;  %s2982_s9 = inlined_call_operand.vmem [shape: f32[2,1,64], index: 9, kind: input, shape index: {}]   ;;  %s2983_s11 = inlined_call_operand.vmem [shape: f32[16,32], index: 11, kind: output, shape index: {}]  }
   0x1   :  { %v39_v0 = vld [vmem:[%s2972_s2] sm:$0xff]  ;;  %v40_v1 = vld [vmem:[%s2972_s2 + $0x8] sm:$0xff]  ;;  %v99_v16 = vld [vmem:[%s2973_s4 + $0x10] sm:$0xff] }
   0x2   :  { %v42_v2 = vsel %vm41_vm0, %v39_v0, 0.0  ;;  %v45_v3 = vsel %vm41_vm0, %v40_v1, 0.0  ;;  %v97_v14 = vld [vmem:[%s2973_s4] sm:$0xff]  ;;  %v98_v15 = vld [vmem:[%s2973_s4 + $0x8] sm:$0xff]  ;;  %v100_v18 = vld [vmem:[%s2973_s4 + $0x18] sm:$0xff]  ;;  %v2491_v26 = vshrl.u32 %v69_v22, 7 }
   0x3   :  { %43 = vadd.xlane.f32.xlu0 %v42_v2  ;;  %v2185_v17 = vpack.c.bf16 %v98_v15, %v97_v14  ;;  %v2189_v19 = vpack.c.bf16 %v100_v18, %v99_v16  ;;  %v38_v29 = vld [vmem:[%s2974_s3] sm:$0x3]  ;;  %vm2528_vm1 = vmpackc.low %vm41_vm0, %vm41_vm0  ;;  %v2539_v54 = vld [vmem:[%s2976_s1 + $0x8] sm:$0xff] }
   0x4   :  { %v2494_v28 = vsub.s32 0, %v2491_v26  ;;  %v2500_v30 = vsub.s32 1, %v2491_v26  ;;  %v1842_v41 = vld [vmem:[%s2975_s5] ss:$0 sm:$0xff]  ;;  %v2544_v55 = vld [vmem:[%s2976_s1 + $0x10] sm:$0xff]  ;;  %v2551_v58 = vld [vmem:[%s2976_s1 + $0x18] sm:$0xff] }
   0x5   :  { %2186 = vmatprep.subr.bf16.mxu1 %v2185_v17  ;;  %v2518_v45 = vld [vmem:[%s2976_s1] sm:$0xff]  ;;  %v2565_v62 = vld [vmem:[%s2976_s1 + $0x28] sm:$0xff]  ;;  %v2571_v63 = vld [vmem:[%s2976_s1 + $0x30] sm:$0xff] }
   0x6   :  { %2188 = vmatpush3.bf16.msra.mxu1 %v2185_v17  ;;  %v72_v31 = vrot.slane %v38_v29, %v2494_v28  ;;  %v78_v34 = vrot.slane %v38_v29, %v2500_v30  ;;  %v2557_v59 = vld [vmem:[%s2976_s1 + $0x20] sm:$0xff]  ;;  %v2579_v2 = vld [vmem:[%s2976_s1 + $0x38] sm:$0xff]  ;;  %v2608_v22 = vld [vmem:[%s2977_s0 + $0x10] sm:$0xff] }
   0x7   :  { %46 = vadd.xlane.f32.xlu0 %v45_v3  ;;  %2190 = vmatprep.subr.bf16.mxu1 %v2189_v19  ;;  %v2601_v16 = vld [vmem:[%s2977_s0 + $0x18] sm:$0xff] }
   0xa   :  { %2192 = vmatpush3.bf16.msra.mxu1 %v2189_v19 }
  0x90   :  { %v44_v4 = vpop.xlane.xlu0 %43 }
  0x91   :  { %v49_v5 = vmul.f32 0.03125, %v44_v4 }
  0x93   :  { %v51_v6 = vsub.f32 %v39_v0, %v49_v5  ;;  %v2588_v5 = vld [vmem:[%s2977_s0 + $0x8] sm:$0xff] }
  0x94   :  { %v47_v7 = vpop.xlane.xlu0 %46 }
  0x95   :  { %v50_v8 = vmul.f32 0.03125, %v47_v7  ;;  %v53_v9 = vmul.f32 %v51_v6, %v51_v6 }
  0x97   :  { %v52_v10 = vsub.f32 %v40_v1, %v50_v8  ;;  %v55_v11 = vsel %vm41_vm0, %v53_v9, 0.0  ;;  %v2593_v9 = vld [vmem:[%s2977_s0] sm:$0xff] }
  0x98   :  { %56 = vadd.xlane.f32.xlu1 %v55_v11 }
  0x99   :  { %v54_v12 = vmul.f32 %v52_v10, %v52_v10 }
  0x9b   :  { %v58_v13 = vsel %vm41_vm0, %v54_v12, 0.0 }
  0x9c   :  { %59 = vadd.xlane.f32.xlu1 %v58_v13 }
 0x125   :  { %v57_v20 = vpop.xlane.xlu1 %56 }
 0x126   :  { %v61_v21 = vmul.f32 0.03125, %v57_v20 }
 0x128   :  { %v63_v23 = vadd.f32 1e-12, %v61_v21 }
 0x129   :  { %v60_v24 = vpop.xlane.xlu1 %59 }
 0x12a   :  { %2307 = vrsqrt.f32 %v63_v23  ;;  %v62_v25 = vmul.f32 0.03125, %v60_v24 }
 0x12c   :  { %v64_v27 = vadd.f32 1e-12, %v62_v25 }
 0x12e   :  { %2309 = vrsqrt.f32 %v64_v27 }
 0x134   :  { %v2308_v32 = vpop.eup %2307 }
 0x135   :  { %v67_v33 = vmul.f32 %v2308_v32, %v51_v6 }
 0x137   :  { %v73_v35 = vmul.f32 %v72_v31, %v67_v33  ;;  %v2620_v33 = vld [vmem:[%s2977_s0 + $0x20] sm:$0xff] }
 0x138   :  { %v2310_v36 = vpop.eup %2309 }
 0x139   :  { %v68_v37 = vmul.f32 %v2310_v36, %v52_v10  ;;  %v2504_v38 = vadd.f32 %v78_v34, %v73_v35 }
 0x13b   :  { %v74_v39 = vmul.f32 %v72_v31, %v68_v37  ;;  %2025 = vmatprep.mubr.msk.f32.mxu1 %vm41_vm0, %v2504_v38  ;;  %v2615_v31 = vld [vmem:[%s2977_s0 + $0x30] sm:$0xff] }
 0x13d   :  { %v2508_v40 = vadd.f32 %v78_v34, %v74_v39 }
 0x13f   :  { %2026 = vmatmul.mubr.msk.f32.vlgmr.msra.gmra.mrb[0].mxu1 %vm41_vm0, %v2508_v40 }
 0x212   :  { %v2027_v42 = vpop.f32.mrb[0].mxu1 }
 0x213   :  { %v204_v43 = vadd.f32 %v2027_v42, %v1842_v41  ;;  %v198_v44 = vpop.f32.mrb[1].mxu1 }
 0x214   :  { %v199_v46 = vadd.f32 %v1842_v41, %v198_v44  ;;  %v2629_v41 = vld [vmem:[%s2977_s0 + $0x28] sm:$0xff] }
 0x215   :  { %v208_v56 = vmul.f32 %v204_v43, %v2539_v54  ;;  %v210_v60 = vmul.f32 %v204_v43, %v2551_v58  ;;  %v212_v0 = vmul.f32 %v204_v43, %v2565_v62  ;;  %v214_v3 = vmul.f32 %v204_v43, %v2579_v2 }
 0x216   :  { %v2520_v47 = vpack.i.bf16 %v204_v43, %v199_v46  ;;  %v207_v48 = vmul.f32 %v199_v46, %v2518_v45  ;;  %v209_v57 = vmul.f32 %v199_v46, %v2544_v55  ;;  %v211_v61 = vmul.f32 %v199_v46, %v2557_v59 }
 0x217   :  { %v213_v1 = vmul.f32 %v199_v46, %v2571_v63  ;;  %v2636_v46 = vld [vmem:[%s2977_s0 + $0x38] sm:$0xff]  ;;  %s2408_s0 = smov 64  }
 0x218   :  { %2288 = vrot.lane.b32.xlu0 %v2520_v47, %s2407_s14  ;;  %2032 = vmatprep.mubr.msk.f32.mxu1 %vm41_vm0, %v207_v48 }
 0x28a   :  { %v2289_v49 = vpop.permute.xlu0 %2288 }
 0x28b   :  { %v2291_v50 = vunpack.i.h.bf16 %v2289_v49  ;;  %v2290_v51 = vunpack.i.l.bf16 %v2289_v49 }
 0x28d   :  { %v2193_v53 = vpack.c.bf16 %v2291_v50, %v2290_v51 }
 0x28f   :  { %2195 = vmatprep.subr.msk.bf16.mxu1 %vm2528_vm1, %v2193_v53 }
 0x290   :  { %2198 = vmatpush3.bf16.xpose.msk.msra.mxu1 %vm2528_vm1, %v2193_v53 }
 0x297   :  { %2033 = vmatmul.mubr.msk.f32.vlgmr.msra.gmra.mrb[2].mxu1 %vm41_vm0, %v208_v56 }
 0x298   :  { %2035 = vmatprep.mubr.msk.f32.mxu1 %vm41_vm0, %v209_v57 }
 0x29b   :  { %2036 = vmatmul.mubr.msk.f32.gmra.mrb[4].mxu1 %vm41_vm0, %v210_v60 }
 0x29c   :  { %2038 = vmatprep.mubr.msk.f32.mxu1 %vm41_vm0, %v211_v61 }
 0x29f   :  { %2039 = vmatmul.mubr.msk.f32.gmra.mrb[6].mxu1 %vm41_vm0, %v212_v0 }
 0x2a0   :  { %2041 = vmatprep.mubr.msk.f32.mxu1 %vm41_vm0, %v213_v1 }
 0x2a3   :  { %2042 = vmatmul.mubr.msk.f32.gmra.mrb[8].mxu1 %vm41_vm0, %v214_v3 }
 0x36a   :  { %v2034_v4 = vpop.f32.mrb[2].mxu1 }
 0x36b   :  { %v355_v6 = vmul.f32 0.35355338, %v2034_v4  ;;  %v315_v7 = vpop.f32.mrb[3].mxu1 }
 0x36c   :  { %v354_v8 = vmul.f32 0.35355338, %v315_v7 }
 0x36d   :  { %v363_v10 = vadd.f32 %v355_v6, %v2588_v5 }
 0x36e   :  { %v2037_v11 = vpop.f32.mrb[4].mxu1  ;;  %v362_v15 = vadd.f32 %v354_v8, %v2593_v9 }
 0x36f   :  { %v357_v12 = vmul.f32 0.35355338, %v2037_v11  ;;  %v325_v13 = vpop.f32.mrb[5].mxu1  ;;  %v374_v14 = vsel %vm370_vm2, %v363_v10, -inf }
 0x370   :  { %375 = vmax.xlane.f32.xlu1 %v374_v14  ;;  %v356_v18 = vmul.f32 0.35355338, %v325_v13  ;;  %v371_v20 = vsel %vm370_vm2, %v362_v15, -inf }
 0x371   :  { %v365_v21 = vadd.f32 %v357_v12, %v2601_v16 }
 0x372   :  { %v2040_v17 = vpop.f32.mrb[6].mxu1  ;;  %v364_v29 = vadd.f32 %v356_v18, %v2608_v22 }
 0x373   :  { %v335_v19 = vpop.f32.mrb[7].mxu1  ;;  %v380_v27 = vsel %vm370_vm2, %v365_v21, -inf  ;;  %v359_v35 = vmul.f32 0.35355338, %v2040_v17 }
 0x374   :  { %372 = vmax.xlane.f32.xlu1 %v371_v20  ;;  %v358_v24 = vmul.f32 0.35355338, %v335_v19  ;;  %v377_v36 = vsel %vm370_vm2, %v364_v29, -inf }
 0x375   :  { %v367_v44 = vadd.f32 %v359_v35, %v2629_v41 }
 0x376   :  { %v2043_v23 = vpop.f32.mrb[8].mxu1  ;;  %v366_v37 = vadd.f32 %v358_v24, %v2620_v33 }
 0x377   :  { %v345_v25 = vpop.f32.mrb[9].mxu1  ;;  %v361_v42 = vmul.f32 0.35355338, %v2043_v23  ;;  %v386_v48 = vsel %vm370_vm2, %v367_v44, -inf }
 0x378   :  { %v360_v32 = vmul.f32 0.35355338, %v345_v25  ;;  %381 = vmax.xlane.f32.xlu1 %v380_v27  ;;  %v383_v43 = vsel %vm370_vm2, %v366_v37, -inf }
 0x379   :  { %v369_v49 = vadd.f32 %v361_v42, %v2636_v46 }
 0x37a   :  { %v368_v34 = vadd.f32 %v360_v32, %v2615_v31 }
 0x37b   :  { %v392_v50 = vsel %vm370_vm2, %v369_v49, -inf }
 0x37c   :  { %378 = vmax.xlane.f32.xlu1 %v377_v36  ;;  %v389_v39 = vsel %vm370_vm2, %v368_v34, -inf }
 0x37d   :  { %390 = vmax.xlane.f32.xlu0 %v389_v39 }
 0x380   :  { %384 = vmax.xlane.f32.xlu1 %v383_v43 }
 0x384   :  { %387 = vmax.xlane.f32.xlu1 %v386_v48 }
 0x388   :  { %393 = vmax.xlane.f32.xlu1 %v392_v50 }
 0x3fd   :  { %v376_v51 = vpop.xlane.xlu1 %375 }
 0x3fe   :  { %v396_v53 = vsub.f32 %v363_v10, %v376_v51 }
 0x400   :  { %v405_v56 = vmul.f32 1.442695, %v396_v53 }
 0x401   :  { %v373_v57 = vpop.xlane.xlu1 %372 }
 0x402   :  { %2311 = vpow2.f32 %v405_v56  ;;  %v395_v60 = vsub.f32 %v362_v15, %v373_v57 }
 0x404   :  { %v403_v61 = vmul.f32 1.442695, %v395_v60 }
 0x405   :  { %v382_v0 = vpop.xlane.xlu1 %381 }
 0x406   :  { %2313 = vpow2.f32 %v403_v61  ;;  %v398_v1 = vsub.f32 %v365_v21, %v382_v0 }
 0x408   :  { %v409_v3 = vmul.f32 1.442695, %v398_v1 }
 0x409   :  { %v379_v4 = vpop.xlane.xlu1 %378 }
 0x40a   :  { %2315 = vpow2.f32 %v409_v3  ;;  %v397_v6 = vsub.f32 %v364_v29, %v379_v4  ;;  %v391_v14 = vpop.xlane.xlu0 %390 }
 0x40b   :  { %v401_v20 = vsub.f32 %v368_v34, %v391_v14 }
 0x40c   :  { %v2641_v7 = vpop.eup %2311  ;;  %v407_v8 = vmul.f32 1.442695, %v397_v6 }
 0x40d   :  { %v385_v11 = vpop.xlane.xlu1 %384  ;;  %v422_v12 = vsel %vm370_vm2, %v2641_v7, 0.0  ;;  %v415_v32 = vmul.f32 1.442695, %v401_v20 }
 0x40e   :  { %2317 = vpow2.f32 %v407_v8  ;;  %423 = vadd.xlane.f32.xlu1 %v422_v12  ;;  %v399_v13 = vsub.f32 %v366_v37, %v385_v11 }
 0x410   :  { %v2314_v10 = vpop.eup %2313  ;;  %v411_v21 = vmul.f32 1.442695, %v399_v13 }
 0x411   :  { %v388_v15 = vpop.xlane.xlu1 %387  ;;  %v419_v17 = vsel %vm370_vm2, %v2314_v10, 0.0 }
 0x412   :  { %v400_v18 = vsub.f32 %v367_v44, %v388_v15  ;;  %420 = vadd.xlane.f32.xlu1 %v419_v17 }
 0x414   :  { %v2646_v19 = vpop.eup %2315  ;;  %v413_v23 = vmul.f32 1.442695, %v400_v18 }
 0x415   :  { %v394_v24 = vpop.xlane.xlu1 %393  ;;  %v428_v25 = vsel %vm370_vm2, %v2646_v19, 0.0 }
 0x416   :  { %2319 = vpow2.f32 %v413_v23  ;;  %v402_v27 = vsub.f32 %v369_v49, %v394_v24  ;;  %429 = vadd.xlane.f32.xlu1 %v428_v25 }
 0x417   :  { %2321 = vpow2.f32 %v411_v21 }
 0x418   :  { %v2318_v29 = vpop.eup %2317  ;;  %v417_v35 = vmul.f32 1.442695, %v402_v27  ;;  %v103_v27 = vld [vmem:[%s2978_s6 + $0x8] sm:$0xff] }
 0x419   :  { %v425_v36 = vsel %vm370_vm2, %v2318_v29, 0.0 }
 0x41a   :  { %2323 = vpow2.f32 %v417_v35  ;;  %426 = vadd.xlane.f32.xlu1 %v425_v36  ;;  %v105_v35 = vld [vmem:[%s2978_s6 + $0x18] sm:$0xff] }
 0x41b   :  { %2325 = vpow2.f32 %v415_v32  ;;  %v104_v32 = vld [vmem:[%s2978_s6 + $0x10] sm:$0xff] }
 0x41c   :  { %v2207_v36 = vpack.c.bf16 %v105_v35, %v104_v32 }
 0x420   :  { %v2320_v37 = vpop.eup %2319 }
 0x421   :  { %v434_v34 = vsel %vm370_vm2, %v2320_v37, 0.0  ;;  %v2322_v39 = vpop.eup %2321 }
 0x422   :  { %435 = vadd.xlane.f32.xlu1 %v434_v34  ;;  %v431_v43 = vsel %vm370_vm2, %v2322_v39, 0.0 }
 0x424   :  { %v2324_v42 = vpop.eup %2323 }
 0x425   :  { %v440_v44 = vsel %vm370_vm2, %v2324_v42, 0.0  ;;  %v2326_v48 = vpop.eup %2325 }
 0x426   :  { %432 = vadd.xlane.f32.xlu1 %v431_v43  ;;  %441 = vadd.xlane.f32.xlu0 %v440_v44  ;;  %v437_v49 = vsel %vm370_vm2, %v2326_v48, 0.0 }
 0x42a   :  { %438 = vadd.xlane.f32.xlu1 %v437_v49 }
 0x43b   :  { %2293 = vrot.lane.b32.xlu1 %v2520_v47, %s2408_s0 }
 0x49b   :  { %v424_v50 = vpop.xlane.xlu1 %423 }
 0x49f   :  { %v421_v51 = vpop.xlane.xlu1 %420 }
 0x4a0   :  { %2327 = vrcp.f32 %v421_v51 }
 0x4a1   :  { %2329 = vrcp.f32 %v424_v50 }
 0x4a3   :  { %v430_v53 = vpop.xlane.xlu1 %429 }
 0x4a7   :  { %v427_v57 = vpop.xlane.xlu1 %426 }
 0x4a8   :  { %2331 = vrcp.f32 %v427_v57 }
 0x4a9   :  { %2333 = vrcp.f32 %v430_v53 }
 0x4aa   :  { %v2328_v56 = vpop.eup %2327 }
 0x4ab   :  { %v451_v60 = vmul.f32 %v2328_v56, %v2314_v10  ;;  %v2330_v11 = vpop.eup %2329 }
 0x4ac   :  { %v452_v10 = vmul.f32 %v2330_v11, %v2641_v7  ;;  %v2692_v11 = vld [vmem:[%s2979_s7] sm:$0x3f] }
 0x4ad   :  { %2048 = vmatprep.mubr.msk.f32.mxu0 %vm370_vm2, %v451_v60 }
 0x4af   :  { %v436_v61 = vpop.xlane.xlu1 %435 }
 0x4b2   :  { %v2332_v12 = vpop.eup %2331 }
 0x4b3   :  { %v433_v0 = vpop.xlane.xlu1 %432  ;;  %v442_v47 = vpop.xlane.xlu0 %441  ;;  %v453_v14 = vmul.f32 %v2332_v12, %v2318_v29  ;;  %v611_v12 = vrot.slane %v2692_v11, %v2494_v28 }
 0x4b4   :  { %2335 = vrcp.f32 %v433_v0  ;;  %v2334_v13 = vpop.eup %2333 }
 0x4b5   :  { %2337 = vrcp.f32 %v436_v61  ;;  %v454_v17 = vmul.f32 %v2334_v13, %v2646_v19  ;;  %v102_v19 = vld [vmem:[%s2978_s6] sm:$0xff] }
 0x4b6   :  { %v2203_v29 = vpack.c.bf16 %v103_v27, %v102_v19 }
 0x4b7   :  { %v439_v1 = vpop.xlane.xlu1 %438 }
 0x4b8   :  { %2339 = vrcp.f32 %v439_v1  ;;  %2204 = vmatprep.subr.bf16.mxu1 %v2203_v29 }
 0x4b9   :  { %2341 = vrcp.f32 %v442_v47  ;;  %2206 = vmatpush3.bf16.msra.mxu1 %v2203_v29 }
 0x4ba   :  { %2208 = vmatprep.subr.bf16.mxu1 %v2207_v36 }
 0x4bb   :  { %v2294_v3 = vpop.permute.xlu1 %2293 }
 0x4bc   :  { %v2296_v4 = vunpack.i.h.bf16 %v2294_v3  ;;  %v2295_v6 = vunpack.i.l.bf16 %v2294_v3 }
 0x4bd   :  { %2210 = vmatpush3.bf16.msra.mxu1 %v2207_v36  ;;  %v108_v36 = vld [vmem:[%s2980_s8 + $0x8] sm:$0xff] }
 0x4be   :  { %v2199_v8 = vpack.c.bf16 %v2296_v4, %v2295_v6  ;;  %v2336_v15 = vpop.eup %2335 }
 0x4bf   :  { %v2338_v18 = vpop.eup %2337  ;;  %v455_v20 = vmul.f32 %v2336_v15, %v2322_v39 }
 0x4c0   :  { %2200 = vmatprep.subr.bf16.mxu0 %v2199_v8  ;;  %v456_v23 = vmul.f32 %v2338_v18, %v2320_v37 }
 0x4c1   :  { %2202 = vmatpush3.bf16.msra.mxu0 %v2199_v8 }
 0x4c2   :  { %v2340_v21 = vpop.eup %2339 }
 0x4c3   :  { %v2342_v24 = vpop.eup %2341  ;;  %v457_v25 = vmul.f32 %v2340_v21, %v2326_v48 }
 0x4c4   :  { %2049 = vmatmul.mubr.msk.f32.vlgmr.msra.gmra.mrb[0].mxu0 %vm370_vm2, %v452_v10  ;;  %v458_v7 = vmul.f32 %v2342_v24, %v2324_v42 }
 0x4c5   :  { %2051 = vmatprep.mubr.msk.f32.mxu0 %vm370_vm2, %v453_v14 }
 0x4c8   :  { %2052 = vmatmul.mubr.msk.f32.gmra.mrb[2].mxu0 %vm370_vm2, %v454_v17 }
 0x4c9   :  { %2054 = vmatprep.mubr.msk.f32.mxu0 %vm370_vm2, %v455_v20 }
 0x4cc   :  { %2055 = vmatmul.mubr.msk.f32.gmra.mrb[4].mxu0 %vm370_vm2, %v456_v23 }
 0x4cd   :  { %2057 = vmatprep.mubr.msk.f32.mxu0 %vm370_vm2, %v457_v25 }
 0x4d0   :  { %2058 = vmatmul.mubr.msk.f32.gmra.mrb[6].mxu0 %vm370_vm2, %v458_v7 }
 0x597   :  { %v2050_v37 = vpop.f32.mrb[0].mxu0 }
 0x598   :  { %v555_v34 = vpop.f32.mrb[1].mxu0  ;;  %v595_v42 = vmul.f32 %v2050_v37, %v2539_v54 }
 0x599   :  { %v594_v48 = vmul.f32 %v555_v34, %v2518_v45  ;;  %v109_v34 = vld [vmem:[%s2980_s8 + $0x10] sm:$0xff] }
 0x59b   :  { %v2053_v39 = vpop.f32.mrb[2].mxu0 }
 0x59c   :  { %v597_v43 = vmul.f32 %v2053_v39, %v2551_v58  ;;  %v565_v44 = vpop.f32.mrb[3].mxu0  ;;  %v110_v39 = vld [vmem:[%s2980_s8 + $0x18] sm:$0xff] }
 0x59d   :  { %v596_v49 = vmul.f32 %v565_v44, %v2544_v55 }
 0x59e   :  { %v603_v50 = vadd.f32 %v597_v43, %v595_v42  ;;  %v2215_v42 = vpack.c.bf16 %v110_v39, %v109_v34 }
 0x59f   :  { %v602_v51 = vadd.f32 %v596_v49, %v594_v48  ;;  %v2056_v53 = vpop.f32.mrb[4].mxu0 }
 0x5a0   :  { %v599_v56 = vmul.f32 %v2056_v53, %v2565_v62  ;;  %v575_v57 = vpop.f32.mrb[5].mxu0  ;;  %v729_v53 = vsub.s32 2, %v2491_v26 }
 0x5a1   :  { %v598_v60 = vmul.f32 %v575_v57, %v2557_v59 }
 0x5a2   :  { %v605_v61 = vadd.f32 %v603_v50, %v599_v56  ;;  %v724_v56 = vrot.slane %v2692_v11, %v2500_v30 }
 0x5a3   :  { %v604_v0 = vadd.f32 %v602_v51, %v598_v60  ;;  %v2059_v1 = vpop.f32.mrb[6].mxu0 }
 0x5a4   :  { %v601_v3 = vmul.f32 %v2059_v1, %v2579_v2  ;;  %v585_v4 = vpop.f32.mrb[7].mxu0 }
 0x5a5   :  { %v600_v6 = vmul.f32 %v585_v4, %v2571_v63 }
 0x5a6   :  { %v607_v47 = vadd.f32 %v605_v61, %v601_v3  ;;  %v730_v61 = vrot.slane %v2692_v11, %v729_v53 }
 0x5a7   :  { %v606_v8 = vadd.f32 %v604_v0, %v600_v6 }
 0x5a9   :  { %2068 = vmatprep.mubr.msk.f32.mxu1 %vm41_vm0, %v606_v8  ;;  %v112_v8 = vld [vmem:[%s2981_s10] sm:$0xff] }
 0x5aa   :  { %2069 = vmatmul.mubr.msk.f32.vlgmr.msra.gmra.mrb[10].mxu1 %vm41_vm0, %v607_v47 }
 0x67d   :  { %v2070_v10 = vpop.f32.mrb[10].mxu1 }
 0x67e   :  { %v684_v13 = vpop.f32.mrb[11].mxu1  ;;  %v690_v14 = vadd.f32 %v2070_v10, %v611_v12 }
 0x67f   :  { %v685_v15 = vadd.f32 %v684_v13, %v611_v12  ;;  %v113_v12 = vld [vmem:[%s2981_s10 + $0x8] sm:$0xff]  ;;  %v114_v13 = vld [vmem:[%s2981_s10 + $0x10] sm:$0xff] }
 0x680   :  { %v694_v20 = vadd.f32 %v690_v14, %v2508_v40  ;;  %v107_v40 = vld [vmem:[%s2980_s8] sm:$0xff]  ;;  %v2219_v10 = vpack.c.bf16 %v113_v12, %v112_v8  ;;  %v115_v14 = vld [vmem:[%s2981_s10 + $0x18] sm:$0xff] }
 0x681   :  { %v693_v17 = vadd.f32 %v685_v15, %v2504_v38  ;;  %v2211_v37 = vpack.c.bf16 %v108_v36, %v107_v40  ;;  %v2223_v15 = vpack.c.bf16 %v115_v14, %v114_v13 }
 0x682   :  { %v698_v21 = vsel %vm41_vm0, %v694_v20, 0.0  ;;  %2220 = vmatprep.subr.bf16.mxu1 %v2219_v10 }
 0x683   :  { %v695_v18 = vsel %vm41_vm0, %v693_v17, 0.0  ;;  %2212 = vmatprep.subr.bf16.mxu0 %v2211_v37  ;;  %2222 = vmatpush3.bf16.msra.mxu1 %v2219_v10 }
 0x684   :  { %696 = vadd.xlane.f32.xlu0 %v695_v18  ;;  %2214 = vmatpush3.bf16.msra.mxu0 %v2211_v37  ;;  %v117_v18 = vld [vmem:[%s2981_s10 + $0x28] sm:$0xff] }
 0x685   :  { %2216 = vmatprep.subr.bf16.mxu0 %v2215_v42  ;;  %2224 = vmatprep.subr.bf16.mxu1 %v2223_v15 }
 0x687   :  { %2226 = vmatpush3.bf16.msra.mxu1 %v2223_v15 }
 0x688   :  { %699 = vadd.xlane.f32.xlu0 %v698_v21  ;;  %2218 = vmatpush3.bf16.msra.mxu0 %v2215_v42  ;;  %v118_v21 = vld [vmem:[%s2981_s10 + $0x30] sm:$0xff] }
 0x711   :  { %v697_v23 = vpop.xlane.xlu0 %696 }
 0x712   :  { %v701_v24 = vmul.f32 0.03125, %v697_v23  ;;  %v119_v23 = vld [vmem:[%s2981_s10 + $0x38] sm:$0xff] }
 0x714   :  { %v703_v25 = vsub.f32 %v693_v17, %v701_v24  ;;  %v116_v17 = vld [vmem:[%s2981_s10 + $0x20] sm:$0xff]  ;;  %v2231_v24 = vpack.c.bf16 %v119_v23, %v118_v21 }
 0x715   :  { %v700_v7 = vpop.xlane.xlu0 %699 }
 0x716   :  { %v702_v19 = vmul.f32 0.03125, %v700_v7  ;;  %v705_v27 = vmul.f32 %v703_v25, %v703_v25 }
 0x718   :  { %v704_v29 = vsub.f32 %v694_v20, %v702_v19  ;;  %v707_v32 = vsel %vm41_vm0, %v705_v27, 0.0  ;;  %v2227_v20 = vpack.c.bf16 %v117_v18, %v116_v17 }
 0x719   :  { %708 = vadd.xlane.f32.xlu0 %v707_v32 }
 0x71a   :  { %v706_v35 = vmul.f32 %v704_v29, %v704_v29  ;;  %2228 = vmatprep.subr.bf16.mxu1 %v2227_v20 }
 0x71b   :  { %2230 = vmatpush3.bf16.msra.mxu1 %v2227_v20 }
 0x71c   :  { %v710_v38 = vsel %vm41_vm0, %v706_v35, 0.0  ;;  %2232 = vmatprep.subr.bf16.mxu1 %v2231_v24 }
 0x71d   :  { %711 = vadd.xlane.f32.xlu0 %v710_v38 }
 0x71f   :  { %2234 = vmatpush3.bf16.msra.mxu1 %v2231_v24 }
 0x7a6   :  { %v709_v43 = vpop.xlane.xlu0 %708 }
 0x7a7   :  { %v713_v44 = vmul.f32 0.03125, %v709_v43 }
 0x7a9   :  { %v715_v48 = vadd.f32 1e-12, %v713_v44 }
 0x7aa   :  { %v712_v49 = vpop.xlane.xlu0 %711 }
 0x7ab   :  { %2343 = vrsqrt.f32 %v715_v48  ;;  %v714_v50 = vmul.f32 0.03125, %v712_v49 }
 0x7ad   :  { %v716_v51 = vadd.f32 1e-12, %v714_v50 }
 0x7af   :  { %2345 = vrsqrt.f32 %v716_v51 }
 0x7b5   :  { %v2344_v57 = vpop.eup %2343 }
 0x7b6   :  { %v719_v60 = vmul.f32 %v2344_v57, %v703_v25  ;;  %v1865_v25 = vld [vmem:[%s2982_s9] ss:$0 sm:$0xff] }
 0x7b8   :  { %v725_v0 = vmul.f32 %v724_v56, %v719_v60 }
 0x7b9   :  { %v2346_v1 = vpop.eup %2345 }
 0x7ba   :  { %v720_v3 = vmul.f32 %v2346_v1, %v704_v29  ;;  %v731_v4 = vadd.f32 %v730_v61, %v725_v0 }
 0x7bc   :  { %v726_v6 = vmul.f32 %v724_v56, %v720_v3  ;;  %2079 = vmatprep.mubr.msk.f32.mxu0 %vm41_vm0, %v731_v4 }
 0x7be   :  { %v732_v47 = vadd.f32 %v730_v61, %v726_v6  ;;  %v840_v61 = vsub.s32 3, %v2491_v26 }
 0x7c0   :  { %2080 = vmatmul.mubr.msk.f32.vlgmr.msra.gmra.mrb[8].mxu0 %vm41_vm0, %v732_v47  ;;  %v841_v0 = vrot.slane %v2692_v11, %v840_v61 }
 0x893   :  { %v2081_v7 = vpop.f32.mrb[8].mxu0 }
 0x894   :  { %v817_v19 = vadd.f32 %v2081_v7, %v1865_v25  ;;  %v811_v27 = vpop.f32.mrb[9].mxu0 }
 0x895   :  { %v812_v29 = vadd.f32 %v1865_v25, %v811_v27 }
 0x896   :  { %v821_v32 = vmul.f32 %v817_v19, %v817_v19 }
 0x897   :  { %v820_v35 = vmul.f32 %v812_v29, %v812_v29 }
 0x898   :  { %v823_v38 = vmul.f32 %v821_v32, %v817_v19  ;;  %v1873_v32 = vld [vmem:[%s2973_s4 + $0x38] sm:$0xff] }
 0x899   :  { %v822_v40 = vmul.f32 %v820_v35, %v812_v29 }
 0x89a   :  { %v825_v36 = vmul.f32 0.044715, %v823_v38 }
 0x89b   :  { %v824_v37 = vmul.f32 0.044715, %v822_v40 }
 0x89c   :  { %v827_v34 = vadd.f32 %v825_v36, %v817_v19 }
 0x89d   :  { %v826_v39 = vadd.f32 %v824_v37, %v812_v29 }
 0x89e   :  { %v829_v42 = vmul.f32 0.7978846, %v827_v34 }
 0x89f   :  { %v828_v43 = vmul.f32 0.7978846, %v826_v39 }
 0x8a0   :  { %2347 = vtanh.f32 %v829_v42  ;;  %v954_v42 = vsub.s32 4, %v2491_v26 }
 0x8a1   :  { %2349 = vtanh.f32 %v828_v43  ;;  %v960_v43 = vsub.s32 5, %v2491_v26 }
 0x8aa   :  { %v2348_v44 = vpop.eup %2347 }
 0x8ab   :  { %v2350_v48 = vpop.eup %2349  ;;  %v833_v49 = vadd.f32 1.0, %v2348_v44  ;;  %v955_v44 = vrot.slane %v2692_v11, %v954_v42 }
 0x8ac   :  { %v832_v50 = vadd.f32 1.0, %v2350_v48 }
 0x8ad   :  { %v835_v51 = vmul.f32 0.5, %v833_v49 }
 0x8ae   :  { %v834_v56 = vmul.f32 0.5, %v832_v50  ;;  %v961_v50 = vrot.slane %v2692_v11, %v960_v43 }
 0x8af   :  { %v837_v60 = vmul.f32 %v835_v51, %v817_v19  ;;  %v1871_v19 = vld [vmem:[%s2973_s4 + $0x28] sm:$0xff] }
 0x8b0   :  { %v836_v57 = vmul.f32 %v834_v56, %v812_v29  ;;  %v1872_v29 = vld [vmem:[%s2973_s4 + $0x30] sm:$0xff] }
 0x8b1   :  { %v2239_v35 = vpack.c.bf16 %v1873_v32, %v1872_v29 }
 0x8b2   :  { %2098 = vmatprep.mubr.msk.f32.mxu1 %vm842_vm3, %v836_v57 }
 0x8b3   :  { %2099 = vmatmul.mubr.msk.f32.vlgmr.msra.gmra.mrb[12].mxu1 %vm842_vm3, %v837_v60 }
 0x986   :  { %v2100_v1 = vpop.f32.mrb[12].mxu1 }
 0x987   :  { %v921_v3 = vadd.f32 %v2100_v1, %v841_v0  ;;  %v915_v6 = vpop.f32.mrb[13].mxu1 }
 0x988   :  { %v916_v8 = vadd.f32 %v915_v6, %v841_v0 }
 0x989   :  { %v925_v12 = vadd.f32 %v921_v3, %v732_v47  ;;  %v1893_v3 = vld [vmem:[%s2975_s5 + $0x1] ss:$0 sm:$0xff] }
 0x98a   :  { %v924_v10 = vadd.f32 %v916_v8, %v731_v4  ;;  %v1870_v4 = vld [vmem:[%s2973_s4 + $0x20] sm:$0xff] }
 0x98b   :  { %v929_v13 = vsel %vm41_vm0, %v925_v12, 0.0  ;;  %v2235_v27 = vpack.c.bf16 %v1871_v19, %v1870_v4 }
 0x98c   :  { %930 = vadd.xlane.f32.xlu1 %v929_v13  ;;  %v926_v14 = vsel %vm41_vm0, %v924_v10, 0.0 }
 0x98d   :  { %927 = vadd.xlane.f32.xlu0 %v926_v14  ;;  %2236 = vmatprep.subr.bf16.mxu0 %v2235_v27 }
 0x98e   :  { %2238 = vmatpush3.bf16.msra.mxu0 %v2235_v27 }
 0x98f   :  { %2240 = vmatprep.subr.bf16.mxu0 %v2239_v35 }
 0x992   :  { %2242 = vmatpush3.bf16.msra.mxu0 %v2239_v35 }
 0xa19   :  { %v931_v15 = vpop.xlane.xlu1 %930 }
 0xa1a   :  { %v933_v17 = vmul.f32 0.03125, %v931_v15  ;;  %v928_v18 = vpop.xlane.xlu0 %927 }
 0xa1b   :  { %v932_v20 = vmul.f32 0.03125, %v928_v18 }
 0xa1c   :  { %v935_v21 = vsub.f32 %v925_v12, %v933_v17 }
 0xa1d   :  { %v934_v23 = vsub.f32 %v924_v10, %v932_v20 }
 0xa1e   :  { %v937_v7 = vmul.f32 %v935_v21, %v935_v21 }
 0xa1f   :  { %v936_v24 = vmul.f32 %v934_v23, %v934_v23 }
 0xa20   :  { %v941_v47 = vsel %vm41_vm0, %v937_v7, 0.0 }
 0xa21   :  { %v938_v25 = vsel %vm41_vm0, %v936_v24, 0.0 }
 0xa22   :  { %939 = vadd.xlane.f32.xlu0 %v938_v25 }
 0xa26   :  { %942 = vadd.xlane.f32.xlu0 %v941_v47 }
 0xaaf   :  { %v940_v38 = vpop.xlane.xlu0 %939 }
 0xab0   :  { %v944_v40 = vmul.f32 0.03125, %v940_v38 }
 0xab2   :  { %v946_v36 = vadd.f32 1e-12, %v944_v40 }
 0xab3   :  { %v943_v37 = vpop.xlane.xlu0 %942 }
 0xab4   :  { %2351 = vrsqrt.f32 %v946_v36  ;;  %v945_v34 = vmul.f32 0.03125, %v943_v37 }
 0xab6   :  { %v947_v39 = vadd.f32 1e-12, %v945_v34 }
 0xab8   :  { %2353 = vrsqrt.f32 %v947_v39 }
 0xabe   :  { %v2352_v48 = vpop.eup %2351 }
 0xabf   :  { %v950_v49 = vmul.f32 %v2352_v48, %v934_v23 }
 0xac1   :  { %v956_v51 = vmul.f32 %v955_v44, %v950_v49 }
 0xac2   :  { %v2354_v56 = vpop.eup %2353 }
 0xac3   :  { %v951_v57 = vmul.f32 %v2354_v56, %v935_v21  ;;  %v2779_v60 = vadd.f32 %v961_v50, %v956_v51 }
 0xac5   :  { %v957_v0 = vmul.f32 %v955_v44, %v951_v57  ;;  %2109 = vmatprep.mubr.msk.f32.mxu0 %vm41_vm0, %v2779_v60 }
 0xac7   :  { %v2783_v1 = vadd.f32 %v961_v50, %v957_v0 }
 0xac9   :  { %2110 = vmatmul.mubr.msk.f32.vlgmr.msra.gmra.mrb[10].mxu0 %vm41_vm0, %v2783_v1 }
 0xb9c   :  { %v2111_v6 = vpop.f32.mrb[10].mxu0 }
 0xb9d   :  { %v1078_v11 = vadd.f32 %v2111_v6, %v1893_v3  ;;  %v1072_v8 = vpop.f32.mrb[11].mxu0 }
 0xb9e   :  { %v1073_v12 = vadd.f32 %v1893_v3, %v1072_v8 }
 0xb9f   :  { %v1082_v20 = vmul.f32 %v1078_v11, %v2539_v54  ;;  %v1086_v24 = vmul.f32 %v1078_v11, %v2565_v62  ;;  %v1088_v54 = vmul.f32 %v1078_v11, %v2579_v2 }
 0xba0   :  { %v2790_v10 = vpack.i.bf16 %v1078_v11, %v1073_v12  ;;  %v1081_v13 = vmul.f32 %v1073_v12, %v2518_v45  ;;  %v1083_v21 = vmul.f32 %v1073_v12, %v2544_v55  ;;  %v1084_v45 = vmul.f32 %v1078_v11, %v2551_v58 }
 0xba1   :  { %v1085_v23 = vmul.f32 %v1073_v12, %v2557_v59  ;;  %v1087_v52 = vmul.f32 %v1073_v12, %v2571_v63 }
 0xba2   :  { %2298 = vrot.lane.b32.xlu0 %v2790_v10, %s2407_s14  ;;  %2116 = vmatprep.mubr.msk.f32.mxu0 %vm41_vm0, %v1081_v13 }
 0xc14   :  { %v2299_v14 = vpop.permute.xlu0 %2298 }
 0xc15   :  { %v2301_v15 = vunpack.i.h.bf16 %v2299_v14  ;;  %v2300_v17 = vunpack.i.l.bf16 %v2299_v14 }
 0xc17   :  { %v2243_v18 = vpack.c.bf16 %v2301_v15, %v2300_v17 }
 0xc19   :  { %2245 = vmatprep.subr.msk.bf16.mxu0 %vm2528_vm1, %v2243_v18 }
 0xc1a   :  { %2248 = vmatpush3.bf16.xpose.msk.msra.mxu0 %vm2528_vm1, %v2243_v18 }
 0xc21   :  { %2117 = vmatmul.mubr.msk.f32.vlgmr.msra.gmra.mrb[12].mxu0 %vm41_vm0, %v1082_v20 }
 0xc22   :  { %2119 = vmatprep.mubr.msk.f32.mxu0 %vm41_vm0, %v1083_v21 }
 0xc25   :  { %2120 = vmatmul.mubr.msk.f32.gmra.mrb[14].mxu0 %vm41_vm0, %v1084_v45 }
 0xc26   :  { %2122 = vmatprep.mubr.msk.f32.mxu0 %vm41_vm0, %v1085_v23 }
 0xc29   :  { %2123 = vmatmul.mubr.msk.f32.gmra.mrb[16].mxu0 %vm41_vm0, %v1086_v24 }
 0xc2a   :  { %2125 = vmatprep.mubr.msk.f32.mxu0 %vm41_vm0, %v1087_v52 }
 0xc2d   :  { %2126 = vmatmul.mubr.msk.f32.gmra.mrb[18].mxu0 %vm41_vm0, %v1088_v54 }
 0xcf4   :  { %v2118_v55 = vpop.f32.mrb[12].mxu0 }
 0xcf5   :  { %v1229_v58 = vmul.f32 0.35355338, %v2118_v55  ;;  %v1189_v25 = vpop.f32.mrb[13].mxu0 }
 0xcf6   :  { %v1228_v59 = vmul.f32 0.35355338, %v1189_v25 }
 0xcf7   :  { %v1237_v7 = vadd.f32 %v1229_v58, %v2588_v5 }
 0xcf8   :  { %v2121_v47 = vpop.f32.mrb[14].mxu0  ;;  %v1236_v4 = vadd.f32 %v1228_v59, %v2593_v9 }
 0xcf9   :  { %v1231_v62 = vmul.f32 0.35355338, %v2121_v47  ;;  %v1199_v19 = vpop.f32.mrb[15].mxu0  ;;  %v1247_v63 = vsel %vm370_vm2, %v1237_v7, -inf }
 0xcfa   :  { %v1230_v27 = vmul.f32 0.35355338, %v1199_v19  ;;  %1248 = vmax.xlane.f32.xlu1 %v1247_v63  ;;  %v1244_v29 = vsel %vm370_vm2, %v1236_v4, -inf }
 0xcfb   :  { %1245 = vmax.xlane.f32.xlu0 %v1244_v29  ;;  %v1239_v2 = vadd.f32 %v1231_v62, %v2601_v16 }
 0xcfc   :  { %v2124_v32 = vpop.f32.mrb[16].mxu0  ;;  %v1238_v5 = vadd.f32 %v1230_v27, %v2608_v22 }
 0xcfd   :  { %v1233_v35 = vmul.f32 0.35355338, %v2124_v32  ;;  %v1209_v38 = vpop.f32.mrb[17].mxu0  ;;  %v1253_v40 = vsel %vm370_vm2, %v1239_v2, -inf }
 0xcfe   :  { %1254 = vmax.xlane.f32.xlu1 %v1253_v40  ;;  %v1232_v36 = vmul.f32 0.35355338, %v1209_v38  ;;  %v1250_v34 = vsel %vm370_vm2, %v1238_v5, -inf }
 0xcff   :  { %v1241_v39 = vadd.f32 %v1233_v35, %v2629_v41 }
 0xd00   :  { %v2127_v9 = vpop.f32.mrb[18].mxu0  ;;  %v1240_v16 = vadd.f32 %v1232_v36, %v2620_v33 }
 0xd01   :  { %v1219_v37 = vpop.f32.mrb[19].mxu0  ;;  %v1259_v48 = vsel %vm370_vm2, %v1241_v39, -inf  ;;  %v1235_v49 = vmul.f32 0.35355338, %v2127_v9 }
 0xd02   :  { %1251 = vmax.xlane.f32.xlu1 %v1250_v34  ;;  %v1234_v44 = vmul.f32 0.35355338, %v1219_v37  ;;  %v1256_v50 = vsel %vm370_vm2, %v1240_v16, -inf }
 0xd03   :  { %v1243_v56 = vadd.f32 %v1235_v49, %v2636_v46 }
 0xd04   :  { %v1242_v22 = vadd.f32 %v1234_v44, %v2615_v31 }
 0xd05   :  { %v1265_v41 = vsel %vm370_vm2, %v1243_v56, -inf }
 0xd06   :  { %1260 = vmax.xlane.f32.xlu1 %v1259_v48  ;;  %v1262_v51 = vsel %vm370_vm2, %v1242_v22, -inf }
 0xd0a   :  { %1257 = vmax.xlane.f32.xlu1 %v1256_v50 }
 0xd0e   :  { %1263 = vmax.xlane.f32.xlu1 %v1262_v51 }
 0xd12   :  { %1266 = vmax.xlane.f32.xlu1 %v1265_v41 }
 0xd87   :  { %v1249_v57 = vpop.xlane.xlu1 %1248 }
 0xd88   :  { %v1269_v0 = vsub.f32 %v1237_v7, %v1249_v57  ;;  %v1246_v3 = vpop.xlane.xlu0 %1245 }
 0xd89   :  { %v1268_v6 = vsub.f32 %v1236_v4, %v1246_v3 }
 0xd8a   :  { %v1278_v33 = vmul.f32 1.442695, %v1269_v0 }
 0xd8b   :  { %v1276_v11 = vmul.f32 1.442695, %v1268_v6  ;;  %v1255_v8 = vpop.xlane.xlu1 %1254 }
 0xd8c   :  { %2355 = vpow2.f32 %v1278_v33  ;;  %v1271_v12 = vsub.f32 %v1239_v2, %v1255_v8 }
 0xd8d   :  { %2357 = vpow2.f32 %v1276_v11 }
 0xd8e   :  { %v1282_v31 = vmul.f32 1.442695, %v1271_v12 }
 0xd8f   :  { %v1252_v13 = vpop.xlane.xlu1 %1251 }
 0xd90   :  { %2359 = vpow2.f32 %v1282_v31  ;;  %v1270_v14 = vsub.f32 %v1238_v5, %v1252_v13 }
 0xd92   :  { %v1280_v15 = vmul.f32 1.442695, %v1270_v14 }
 0xd93   :  { %v1261_v46 = vpop.xlane.xlu1 %1260 }
 0xd94   :  { %2361 = vpow2.f32 %v1280_v15  ;;  %v1273_v17 = vsub.f32 %v1241_v39, %v1261_v46 }
 0xd96   :  { %v2830_v18 = vpop.eup %2355  ;;  %v1286_v20 = vmul.f32 1.442695, %v1273_v17  ;;  %v1875_v17 = vld [vmem:[%s2978_s6 + $0x20] sm:$0xff] }
 0xd97   :  { %v2358_v21 = vpop.eup %2357  ;;  %v1258_v45 = vpop.xlane.xlu1 %1257  ;;  %v1295_v23 = vsel %vm370_vm2, %v2830_v18, 0.0 }
 0xd98   :  { %2363 = vpow2.f32 %v1286_v20  ;;  %v1272_v24 = vsub.f32 %v1240_v16, %v1258_v45  ;;  %1296 = vadd.xlane.f32.xlu0 %v1295_v23  ;;  %v1292_v52 = vsel %vm370_vm2, %v2358_v21, 0.0  ;;  %v1878_v45 = vld [vmem:[%s2978_s6 + $0x38] sm:$0xff] }
 0xd99   :  { %1293 = vadd.xlane.f32.xlu1 %v1292_v52 }
 0xd9a   :  { %v2360_v54 = vpop.eup %2359  ;;  %v1284_v55 = vmul.f32 1.442695, %v1272_v24 }
 0xd9b   :  { %v1264_v58 = vpop.xlane.xlu1 %1263  ;;  %v1301_v25 = vsel %vm370_vm2, %v2360_v54, 0.0 }
 0xd9c   :  { %2365 = vpow2.f32 %v1284_v55  ;;  %v1274_v59 = vsub.f32 %v1242_v22, %v1264_v58  ;;  %1302 = vadd.xlane.f32.xlu0 %v1301_v25  ;;  %v2399_v55 = vld [vmem:[%s2976_s1 + $0x8] sm:$0xff]  ;;  %v2400_v25 = vld [vmem:[%s2976_s1 + $0x18] sm:$0xff] }
 0xd9e   :  { %v2362_v7 = vpop.eup %2361  ;;  %v1288_v47 = vmul.f32 1.442695, %v1274_v59 }
 0xd9f   :  { %v1267_v4 = vpop.xlane.xlu1 %1266  ;;  %v1298_v62 = vsel %vm370_vm2, %v2362_v7, 0.0 }
 0xda0   :  { %2367 = vpow2.f32 %v1288_v47  ;;  %v1275_v19 = vsub.f32 %v1243_v56, %v1267_v4  ;;  %1299 = vadd.xlane.f32.xlu1 %v1298_v62  ;;  %v2401_v47 = vld [vmem:[%s2976_s1] sm:$0xff]  ;;  %v2402_v62 = vld [vmem:[%s2976_s1 + $0x10] sm:$0xff] }
 0xda2   :  { %v2364_v63 = vpop.eup %2363  ;;  %v1290_v27 = vmul.f32 1.442695, %v1275_v19 }
 0xda3   :  { %v1307_v29 = vsel %vm370_vm2, %v2364_v63, 0.0 }
 0xda4   :  { %2369 = vpow2.f32 %v1290_v27  ;;  %1308 = vadd.xlane.f32.xlu0 %v1307_v29 }
 0xda6   :  { %v2366_v2 = vpop.eup %2365 }
 0xda7   :  { %v1304_v32 = vsel %vm370_vm2, %v2366_v2, 0.0 }
 0xda8   :  { %1305 = vadd.xlane.f32.xlu1 %v1304_v32 }
 0xdaa   :  { %v2368_v35 = vpop.eup %2367 }
 0xdab   :  { %v1310_v38 = vsel %vm370_vm2, %v2368_v35, 0.0 }
 0xdac   :  { %1311 = vadd.xlane.f32.xlu1 %v1310_v38  ;;  %v2404_v38 = vld [vmem:[%s2976_s1 + $0x20] sm:$0xff] }
 0xdae   :  { %v2370_v40 = vpop.eup %2369 }
 0xdaf   :  { %v1313_v5 = vsel %vm370_vm2, %v2370_v40, 0.0 }
 0xdb0   :  { %1314 = vadd.xlane.f32.xlu0 %v1313_v5 }
 0xdbd   :  { %2303 = vrot.lane.b32.xlu1 %v2790_v10, %s2408_s0 }
 0xe25   :  { %v1297_v34 = vpop.xlane.xlu0 %1296 }
 0xe26   :  { %v1294_v9 = vpop.xlane.xlu1 %1293 }
 0xe27   :  { %2371 = vrcp.f32 %v1294_v9 }
 0xe28   :  { %2373 = vrcp.f32 %v1297_v34 }
 0xe29   :  { %v1303_v48 = vpop.xlane.xlu0 %1302 }
 0xe2d   :  { %v1300_v37 = vpop.xlane.xlu1 %1299 }
 0xe2e   :  { %2375 = vrcp.f32 %v1300_v37  ;;  %v2405_v37 = vld [vmem:[%s2976_s1 + $0x38] sm:$0xff] }
 0xe2f   :  { %2377 = vrcp.f32 %v1303_v48 }
 0xe31   :  { %v2372_v36 = vpop.eup %2371  ;;  %v1309_v49 = vpop.xlane.xlu0 %1308 }
 0xe32   :  { %v1324_v39 = vmul.f32 %v2372_v36, %v2358_v21  ;;  %v2374_v41 = vpop.eup %2373  ;;  %v1877_v21 = vld [vmem:[%s2978_s6 + $0x30] sm:$0xff] }
 0xe33   :  { %v1325_v0 = vmul.f32 %v2374_v41, %v2830_v18  ;;  %v1876_v18 = vld [vmem:[%s2978_s6 + $0x28] sm:$0xff]  ;;  %v2257_v23 = vpack.c.bf16 %v1878_v45, %v1877_v21 }
 0xe34   :  { %2132 = vmatprep.mubr.msk.f32.mxu1 %vm370_vm2, %v1324_v39  ;;  %v2253_v20 = vpack.c.bf16 %v1876_v18, %v1875_v17  ;;  %v1882_v18 = vld [vmem:[%s2980_s8 + $0x30] sm:$0xff] }
 0xe35   :  { %v1306_v44 = vpop.xlane.xlu1 %1305 }
 0xe36   :  { %2379 = vrcp.f32 %v1306_v44  ;;  %2254 = vmatprep.subr.bf16.mxu0 %v2253_v20  ;;  %v2406_v44 = vld [vmem:[%s2976_s1 + $0x30] sm:$0xff] }
 0xe37   :  { %2381 = vrcp.f32 %v1309_v49  ;;  %2256 = vmatpush3.bf16.msra.mxu0 %v2253_v20  ;;  %v1883_v20 = vld [vmem:[%s2980_s8 + $0x38] sm:$0xff] }
 0xe38   :  { %v2376_v57 = vpop.eup %2375  ;;  %2258 = vmatprep.subr.bf16.mxu0 %v2257_v23  ;;  %v2265_v21 = vpack.c.bf16 %v1883_v20, %v1882_v18 }
 0xe39   :  { %v1312_v16 = vpop.xlane.xlu1 %1311  ;;  %v2378_v3 = vpop.eup %2377  ;;  %v1326_v6 = vmul.f32 %v2376_v57, %v2362_v7 }
 0xe3a   :  { %2383 = vrcp.f32 %v1312_v16  ;;  %v1327_v11 = vmul.f32 %v2378_v3, %v2360_v54 }
 0xe3b   :  { %2260 = vmatpush3.bf16.msra.mxu0 %v2257_v23 }
 0xe3d   :  { %v2304_v50 = vpop.permute.xlu1 %2303  ;;  %v1315_v10 = vpop.xlane.xlu0 %1314 }
 0xe3e   :  { %v2306_v22 = vunpack.i.h.bf16 %v2304_v50  ;;  %v2305_v51 = vunpack.i.l.bf16 %v2304_v50  ;;  %2385 = vrcp.f32 %v1315_v10  ;;  %v2893_v50 = vld [vmem:[%s2979_s7 + $0x8] sm:$0x3f] }
 0xe40   :  { %v2249_v56 = vpack.c.bf16 %v2306_v22, %v2305_v51  ;;  %v2380_v33 = vpop.eup %2379  ;;  %v1484_v22 = vrot.slane %v2893_v50, %v2494_v28 }
 0xe41   :  { %v2382_v8 = vpop.eup %2381  ;;  %v1328_v12 = vmul.f32 %v2380_v33, %v2366_v2  ;;  %v2403_v2 = vld [vmem:[%s2976_s1 + $0x28] sm:$0xff] }
 0xe42   :  { %2250 = vmatprep.subr.bf16.mxu1 %v2249_v56  ;;  %v1329_v13 = vmul.f32 %v2382_v8, %v2364_v63 }
 0xe43   :  { %2252 = vmatpush3.bf16.msra.mxu1 %v2249_v56 }
 0xe44   :  { %v2384_v31 = vpop.eup %2383 }
 0xe45   :  { %v1330_v15 = vmul.f32 %v2384_v31, %v2368_v35 }
 0xe46   :  { %2133 = vmatmul.mubr.msk.f32.vlgmr.msra.gmra.mrb[14].mxu1 %vm370_vm2, %v1325_v0 }
 0xe47   :  { %2135 = vmatprep.mubr.msk.f32.mxu1 %vm370_vm2, %v1326_v6 }
 0xe48   :  { %v2386_v14 = vpop.eup %2385 }
 0xe49   :  { %v1331_v46 = vmul.f32 %v2386_v14, %v2370_v40 }
 0xe4a   :  { %2136 = vmatmul.mubr.msk.f32.gmra.mrb[16].mxu1 %vm370_vm2, %v1327_v11 }
 0xe4b   :  { %2138 = vmatprep.mubr.msk.f32.mxu1 %vm370_vm2, %v1328_v12 }
 0xe4e   :  { %2139 = vmatmul.mubr.msk.f32.gmra.mrb[18].mxu1 %vm370_vm2, %v1329_v13 }
 0xe4f   :  { %2141 = vmatprep.mubr.msk.f32.mxu1 %vm370_vm2, %v1330_v15 }
 0xe52   :  { %2142 = vmatmul.mubr.msk.f32.gmra.mrb[20].mxu1 %vm370_vm2, %v1331_v46  ;;  %v1881_v46 = vld [vmem:[%s2980_s8 + $0x28] sm:$0xff] }
 0xf19   :  { %v2134_v24 = vpop.f32.mrb[14].mxu1 }
 0xf1a   :  { %v1428_v52 = vpop.f32.mrb[15].mxu1  ;;  %v1468_v58 = vmul.f32 %v2399_v55, %v2134_v24 }
 0xf1b   :  { %v1467_v4 = vmul.f32 %v2401_v47, %v1428_v52 }
 0xf1d   :  { %v2137_v54 = vpop.f32.mrb[16].mxu1 }
 0xf1e   :  { %v1470_v59 = vmul.f32 %v2400_v25, %v2137_v54  ;;  %v1438_v7 = vpop.f32.mrb[17].mxu1 }
 0xf1f   :  { %v1469_v19 = vmul.f32 %v2402_v62, %v1438_v7  ;;  %v1603_v7 = vrot.slane %v2893_v50, %v729_v53  ;;  %v1887_v53 = vld [vmem:[%s2981_s10 + $0x50] sm:$0xff] }
 0xf20   :  { %v1476_v63 = vadd.f32 %v1470_v59, %v1468_v58  ;;  %v1597_v58 = vrot.slane %v2893_v50, %v2500_v30  ;;  %v1885_v30 = vld [vmem:[%s2981_s10 + $0x40] sm:$0xff] }
 0xf21   :  { %v1475_v27 = vadd.f32 %v1469_v19, %v1467_v4  ;;  %v2140_v29 = vpop.f32.mrb[18].mxu1 }
 0xf22   :  { %v1472_v32 = vmul.f32 %v2403_v2, %v2140_v29  ;;  %v1448_v35 = vpop.f32.mrb[19].mxu1  ;;  %v1886_v29 = vld [vmem:[%s2981_s10 + $0x48] sm:$0xff] }
 0xf23   :  { %v1471_v40 = vmul.f32 %v2404_v38, %v1448_v35  ;;  %v2269_v2 = vpack.c.bf16 %v1886_v29, %v1885_v30  ;;  %v1889_v38 = vld [vmem:[%s2981_s10 + $0x60] sm:$0xff]  ;;  %v1827_v30 = vrot.slane %v2893_v50, %v954_v42 }
 0xf24   :  { %v1478_v5 = vadd.f32 %v1476_v63, %v1472_v32  ;;  %v1888_v32 = vld [vmem:[%s2981_s10 + $0x58] sm:$0xff] }
 0xf25   :  { %v1477_v9 = vadd.f32 %v1475_v27, %v1471_v40  ;;  %v2143_v36 = vpop.f32.mrb[20].mxu1  ;;  %2270 = vmatprep.subr.bf16.mxu0 %v2269_v2  ;;  %v2273_v35 = vpack.c.bf16 %v1888_v32, %v1887_v53  ;;  %v1890_v40 = vld [vmem:[%s2981_s10 + $0x68] sm:$0xff] }
 0xf26   :  { %v1474_v34 = vmul.f32 %v2405_v37, %v2143_v36  ;;  %v1458_v39 = vpop.f32.mrb[21].mxu1  ;;  %v1892_v36 = vld [vmem:[%s2981_s10 + $0x78] sm:$0xff] }
 0xf27   :  { %v1473_v48 = vmul.f32 %v2406_v44, %v1458_v39 }
 0xf28   :  { %v1480_v16 = vadd.f32 %v1478_v5, %v1474_v34  ;;  %v2277_v5 = vpack.c.bf16 %v1890_v40, %v1889_v38  ;;  %v1916_v34 = vld [vmem:[%s2982_s9 + $0x1] ss:$0 sm:$0xff] }
 0xf29   :  { %v1479_v49 = vadd.f32 %v1477_v9, %v1473_v48  ;;  %v1891_v9 = vld [vmem:[%s2981_s10 + $0x70] sm:$0xff] }
 0xf2a   :  { %v2281_v37 = vpack.c.bf16 %v1892_v36, %v1891_v9 }
 0xf2b   :  { %2152 = vmatprep.mubr.msk.f32.mxu0 %vm41_vm0, %v1479_v49 }
 0xf2c   :  { %2153 = vmatmul.mubr.msk.f32.vlgmr.msra.gmra.mrb[20].mxu0 %vm41_vm0, %v1480_v16 }
 0xf2d   :  { %2272 = vmatpush3.bf16.msra.mxu0 %v2269_v2  ;;  %v1833_v2 = vrot.slane %v2893_v50, %v960_v43 }
 0xf2e   :  { %2274 = vmatprep.subr.bf16.mxu0 %v2273_v35 }
 0xf31   :  { %2276 = vmatpush3.bf16.msra.mxu0 %v2273_v35 }
 0xf32   :  { %2278 = vmatprep.subr.bf16.mxu0 %v2277_v5 }
 0xf35   :  { %2280 = vmatpush3.bf16.msra.mxu0 %v2277_v5 }
 0xf36   :  { %2282 = vmatprep.subr.bf16.mxu0 %v2281_v37 }
 0xf39   :  { %2284 = vmatpush3.bf16.msra.mxu0 %v2281_v37 }
 0xfff   :  { %v2154_v51 = vpop.f32.mrb[20].mxu0 }
0x1000   :  { %v1557_v10 = vpop.f32.mrb[21].mxu0  ;;  %v1563_v56 = vadd.f32 %v2154_v51, %v1484_v22 }
0x1001   :  { %v1558_v41 = vadd.f32 %v1557_v10, %v1484_v22 }
0x1002   :  { %v1567_v3 = vadd.f32 %v1563_v56, %v2783_v1  ;;  %v1880_v1 = vld [vmem:[%s2980_s8 + $0x20] sm:$0xff] }
0x1003   :  { %v1566_v57 = vadd.f32 %v1558_v41, %v2779_v60  ;;  %v2261_v17 = vpack.c.bf16 %v1881_v46, %v1880_v1 }
0x1004   :  { %v1571_v6 = vsel %vm41_vm0, %v1567_v3, 0.0 }
0x1005   :  { %v1568_v0 = vsel %vm41_vm0, %v1566_v57, 0.0  ;;  %2262 = vmatprep.subr.bf16.mxu1 %v2261_v17 }
0x1006   :  { %1569 = vadd.xlane.f32.xlu0 %v1568_v0  ;;  %2264 = vmatpush3.bf16.msra.mxu1 %v2261_v17 }
0x1007   :  { %2266 = vmatprep.subr.bf16.mxu1 %v2265_v21 }
0x100a   :  { %1572 = vadd.xlane.f32.xlu0 %v1571_v6  ;;  %2268 = vmatpush3.bf16.msra.mxu1 %v2265_v21 }
0x1093   :  { %v1570_v33 = vpop.xlane.xlu0 %1569 }
0x1094   :  { %v1574_v11 = vmul.f32 0.03125, %v1570_v33 }
0x1096   :  { %v1576_v8 = vsub.f32 %v1566_v57, %v1574_v11 }
0x1097   :  { %v1573_v12 = vpop.xlane.xlu0 %1572 }
0x1098   :  { %v1575_v31 = vmul.f32 0.03125, %v1573_v12  ;;  %v1578_v28 = vmul.f32 %v1576_v8, %v1576_v8 }
0x109a   :  { %v1577_v13 = vsub.f32 %v1567_v3, %v1575_v31  ;;  %v1580_v14 = vsel %vm41_vm0, %v1578_v28, 0.0 }
0x109b   :  { %1581 = vadd.xlane.f32.xlu0 %v1580_v14 }
0x109c   :  { %v1579_v15 = vmul.f32 %v1577_v13, %v1577_v13 }
0x109e   :  { %v1583_v60 = vsel %vm41_vm0, %v1579_v15, 0.0  ;;  %v1714_v15 = vrot.slane %v2893_v50, %v840_v61 }
0x109f   :  { %1584 = vadd.xlane.f32.xlu0 %v1583_v60 }
0x1128   :  { %v1582_v45 = vpop.xlane.xlu0 %1581 }
0x1129   :  { %v1586_v23 = vmul.f32 0.03125, %v1582_v45 }
0x112b   :  { %v1588_v24 = vadd.f32 1e-12, %v1586_v23 }
0x112c   :  { %v1585_v52 = vpop.xlane.xlu0 %1584 }
0x112d   :  { %2387 = vrsqrt.f32 %v1588_v24  ;;  %v1587_v54 = vmul.f32 0.03125, %v1585_v52 }
0x112f   :  { %v1589_v55 = vadd.f32 1e-12, %v1587_v54 }
0x1131   :  { %2389 = vrsqrt.f32 %v1589_v55 }
0x1137   :  { %v2388_v25 = vpop.eup %2387 }
0x1138   :  { %v1592_v59 = vmul.f32 %v2388_v25, %v1576_v8 }
0x113a   :  { %v1598_v47 = vmul.f32 %v1597_v58, %v1592_v59 }
0x113b   :  { %v2390_v4 = vpop.eup %2389 }
0x113c   :  { %v1593_v62 = vmul.f32 %v2390_v4, %v1577_v13  ;;  %v1604_v19 = vadd.f32 %v1603_v7, %v1598_v47 }
0x113e   :  { %v1599_v63 = vmul.f32 %v1597_v58, %v1593_v62  ;;  %2163 = vmatprep.mubr.msk.f32.mxu1 %vm41_vm0, %v1604_v19 }
0x1140   :  { %v1605_v27 = vadd.f32 %v1603_v7, %v1599_v63 }
0x1142   :  { %2164 = vmatmul.mubr.msk.f32.vlgmr.msra.gmra.mrb[22].mxu1 %vm41_vm0, %v1605_v27 }
0x1215   :  { %v2165_v39 = vpop.f32.mrb[22].mxu1 }
0x1216   :  { %v1690_v44 = vadd.f32 %v2165_v39, %v1916_v34  ;;  %v1684_v48 = vpop.f32.mrb[23].mxu1 }
0x1217   :  { %v1685_v16 = vadd.f32 %v1916_v34, %v1684_v48 }
0x1218   :  { %v1694_v49 = vmul.f32 %v1690_v44, %v1690_v44 }
0x1219   :  { %v1693_v22 = vmul.f32 %v1685_v16, %v1685_v16 }
0x121a   :  { %v1696_v51 = vmul.f32 %v1694_v49, %v1690_v44 }
0x121b   :  { %v1695_v10 = vmul.f32 %v1693_v22, %v1685_v16 }
0x121c   :  { %v1698_v56 = vmul.f32 0.044715, %v1696_v51 }
0x121d   :  { %v1697_v41 = vmul.f32 0.044715, %v1695_v10 }
0x121e   :  { %v1700_v57 = vadd.f32 %v1698_v56, %v1690_v44 }
0x121f   :  { %v1699_v0 = vadd.f32 %v1697_v41, %v1685_v16 }
0x1220   :  { %v1702_v3 = vmul.f32 0.7978846, %v1700_v57 }
0x1221   :  { %v1701_v6 = vmul.f32 0.7978846, %v1699_v0 }
0x1222   :  { %2391 = vtanh.f32 %v1702_v3 }
0x1223   :  { %2393 = vtanh.f32 %v1701_v6 }
0x122c   :  { %v2392_v33 = vpop.eup %2391 }
0x122d   :  { %v2394_v11 = vpop.eup %2393  ;;  %v1706_v8 = vadd.f32 1.0, %v2392_v33 }
0x122e   :  { %v1705_v12 = vadd.f32 1.0, %v2394_v11 }
0x122f   :  { %v1708_v31 = vmul.f32 0.5, %v1706_v8 }
0x1230   :  { %v1707_v28 = vmul.f32 0.5, %v1705_v12 }
0x1231   :  { %v1710_v14 = vmul.f32 %v1708_v31, %v1690_v44 }
0x1232   :  { %v1709_v13 = vmul.f32 %v1707_v28, %v1685_v16 }
0x1234   :  { %2182 = vmatprep.mubr.msk.f32.mxu0 %vm842_vm3, %v1709_v13 }
0x1235   :  { %2183 = vmatmul.mubr.msk.f32.vlgmr.msra.gmra.mrb[22].mxu0 %vm842_vm3, %v1710_v14 }
0x1308   :  { %v2184_v60 = vpop.f32.mrb[22].mxu0 }
0x1309   :  { %v1793_v1 = vadd.f32 %v2184_v60, %v1714_v15  ;;  %v1787_v46 = vpop.f32.mrb[23].mxu0 }
0x130a   :  { %v1788_v17 = vadd.f32 %v1787_v46, %v1714_v15 }
0x130b   :  { %v1797_v18 = vadd.f32 %v1793_v1, %v1605_v27 }
0x130c   :  { %v1796_v20 = vadd.f32 %v1788_v17, %v1604_v19 }
0x130d   :  { %v1801_v21 = vsel %vm41_vm0, %v1797_v18, 0.0 }
0x130e   :  { %1802 = vadd.xlane.f32.xlu1 %v1801_v21  ;;  %v1798_v45 = vsel %vm41_vm0, %v1796_v20, 0.0 }
0x130f   :  { %1799 = vadd.xlane.f32.xlu0 %v1798_v45 }
0x139b   :  { %v1803_v23 = vpop.xlane.xlu1 %1802 }
0x139c   :  { %v1805_v24 = vmul.f32 0.03125, %v1803_v23  ;;  %v1800_v52 = vpop.xlane.xlu0 %1799 }
0x139d   :  { %v1804_v54 = vmul.f32 0.03125, %v1800_v52 }
0x139e   :  { %v1807_v55 = vsub.f32 %v1797_v18, %v1805_v24 }
0x139f   :  { %v1806_v58 = vsub.f32 %v1796_v20, %v1804_v54 }
0x13a0   :  { %v1809_v59 = vmul.f32 %v1807_v55, %v1807_v55 }
0x13a1   :  { %v1808_v25 = vmul.f32 %v1806_v58, %v1806_v58 }
0x13a2   :  { %v1813_v7 = vsel %vm41_vm0, %v1809_v59, 0.0 }
0x13a3   :  { %v1810_v61 = vsel %vm41_vm0, %v1808_v25, 0.0 }
0x13a4   :  { %1811 = vadd.xlane.f32.xlu0 %v1810_v61 }
0x13a8   :  { %1814 = vadd.xlane.f32.xlu0 %v1813_v7 }
0x1431   :  { %v1812_v47 = vpop.xlane.xlu0 %1811 }
0x1432   :  { %v1816_v4 = vmul.f32 0.03125, %v1812_v47 }
0x1434   :  { %v1818_v62 = vadd.f32 1e-12, %v1816_v4 }
0x1435   :  { %v1815_v19 = vpop.xlane.xlu0 %1814 }
0x1436   :  { %2395 = vrsqrt.f32 %v1818_v62  ;;  %v1817_v63 = vmul.f32 0.03125, %v1815_v19 }
0x1438   :  { %v1819_v27 = vadd.f32 1e-12, %v1817_v63 }
0x143a   :  { %2397 = vrsqrt.f32 %v1819_v27 }
0x1440   :  { %v2396_v29 = vpop.eup %2395 }
0x1441   :  { %v1822_v53 = vmul.f32 %v2396_v29, %v1806_v58 }
0x1443   :  { %v1828_v32 = vmul.f32 %v1827_v30, %v1822_v53 }
0x1444   :  { %v2398_v35 = vpop.eup %2397 }
0x1445   :  { %v1834_v38 = vadd.f32 %v1833_v2, %v1828_v32  ;;  %v1823_v40 = vmul.f32 %v2398_v35, %v1807_v55 }
0x1447   :  { %1836 = vst.msk [vmem:[%s2983_s11] sm:$0xff] %vm41_vm0, %v1834_v38  ;;  %v1829_v5 = vmul.f32 %v1827_v30, %v1823_v40 }
0x1449   :  { %v1835_v9 = vadd.f32 %v1833_v2, %v1829_v5 }
0x144b   :  { %1837 = vst.msk [vmem:[%s2983_s11 + $0x8] sm:$0xff] %vm41_vm0, %v1835_v9 }

</bundles_post_ra>
